<compile_context>
chip_gen: v6e
topology: v6e:2x2x1
jax: 0.10.0
libtpu: 0.0.40
codegen_flags: <defaults>
</compile_context>

<pallas_src>
import jax
import jax.numpy as jnp
from jax.experimental import pallas as pl
from jax.experimental.pallas import tpu as pltpu


def _round_up(x, m):
    return (x + m - 1) // m * m


def _pad_last(x, target):
    pad = target - x.shape[-1]
    if pad == 0:
        return x
    return jnp.pad(x, [(0, 0)] * (x.ndim - 1) + [(0, pad)])


# -----------------------------------------------------------------------------
# Host-side weight packing: 12 tensors -> 5 slabs.  Call ONCE (weights are
# static for inference) and reuse the result for every forward call.
# -----------------------------------------------------------------------------
def pack_head_params(p, *, mxu_dtype=jnp.bfloat16, slot_dtype=None,
                     mxu_lane_multiple=256):
    """Pack the head weights into lane-padded slabs.

    mxu_dtype:          operand dtype for all MXU matmuls.  bf16 on every TPU
                        generation (v5e has no f32 MXU; v6e/v7x get 2x rate and
                        half the DMA bytes).  f32 only for exact verification.
    slot_dtype:         storage dtype of the slot-logit output slab
                        (None -> same as mxu_dtype).
    mxu_lane_multiple:  stage-1 slab width padding (256 for v6e/v7x 2x256^2 MXU
                        tiles, 128 for v5e's 4x128^2 MXU).
    """
    H, NS = p["w_slot"].shape
    D = p["wq"].shape[1]
    NI = p["wo"].shape[1]
    NSp = _round_up(NS, 128)              # lane-dense slot-logit width
    NIp = _round_up(NI, 128)              # lane-dense intent-logit width
    KV = 2 * D                            # packed [K|V] width
    W1 = _round_up(NSp + KV, mxu_lane_multiple)   # stage-1 slab width

    # stage-1 slab: emb @ [w_slot_pad | wk_emb | wv_emb | 0-pad] -> (H, W1)
    w_slot_p = _pad_last(p["w_slot"], NSp)
    w_kv_emb = jnp.concatenate([p["wk_emb"], p["wv_emb"]], axis=1)
    w1 = _pad_last(jnp.concatenate([w_slot_p, w_kv_emb], axis=1), W1)
    w1 = w1.astype(mxu_dtype)

    # slot-half of the K/V projection: (NSp, 2D), rows >= NS are zero
    w_kv_slot = jnp.concatenate([p["wk_slot"], p["wv_slot"]], axis=1)
    w_kv_slot = jnp.pad(w_kv_slot, ((0, NSp - NS), (0, 0))).astype(mxu_dtype)

    wq = p["wq"].astype(mxu_dtype)                       # (H, D)
    wo = _pad_last(p["wo"], NIp).astype(mxu_dtype)       # (D, NIp)

    # one bias slab, every segment 128-lane aligned:
    #   [ b_slot (NSp) | b_k|b_v (ceil(2D,128)) | b_q (ceil(D,128)) | b_o (NIp) ]
    b_slot = _pad_last(p["b_slot"], NSp)
    b_kv = _pad_last(jnp.concatenate([p["bk"], p["bv"]], axis=1),
                     _round_up(KV, 128))
    b_q = _pad_last(p["bq"], _round_up(D, 128))
    b_o = _pad_last(p["bo"], NIp)
    bias = jnp.concatenate([b_slot, b_kv, b_q, b_o], axis=1).astype(jnp.float32)

    dims = dict(H=H, NS=NS, NI=NI, D=D, NSp=NSp, NIp=NIp, KV=KV, W1=W1)
    return dict(w1=w1, w_kv_slot=w_kv_slot, wq=wq, wo=wo, bias=bias, dims=dims,
                mxu_dtype=mxu_dtype,
                slot_dtype=(mxu_dtype if slot_dtype is None else slot_dtype))


# -----------------------------------------------------------------------------
# Pallas kernel: one batch tile (Bt rows) per grid step
# -----------------------------------------------------------------------------
def _cross_att_intent_kernel(
    emb_ref,         # (Bt*S, H)  mxu_dtype  tall 2-D slab (reshaped in wrapper)
    pool_ref,        # (Bt, H)    mxu_dtype  pooler_output tile
    mask_ref,        # (Bt, S)    f32        attention mask (1 = keep, 0 = pad)
    w1_ref,          # (H, W1)    [w_slot_pad | wk_emb | wv_emb | 0-pad]
    wkvs_ref,        # (NSp, 2D)  [wk_slot | wv_slot] (zero-padded rows)
    wq_ref,          # (H, D)
    wo_ref,          # (D, NIp)
    bias_ref,        # (1, NSp + ceil(2D,128) + ceil(D,128) + NIp)  f32
    slot_out_ref,    # (Bt*S, NSp)  lane-dense slot-logit slab
    intent_out_ref,  # (Bt, NIp)    lane-dense intent-logit slab
):
    f32 = jnp.float32
    Bt, S = mask_ref.shape
    NSp, KV = wkvs_ref.shape
    D = wq_ref.shape[1]
    NIp = wo_ref.shape[1]
    mxu_dtype = w1_ref.dtype

    # static, 128-aligned lane offsets into the packed bias slab
    off_kv = NSp
    off_q = off_kv + _round_up(KV, 128)
    off_o = off_q + _round_up(D, 128)

    emb2 = emb_ref[...]          # already mxu_dtype, no cast / reshape here
    pool = pool_ref[...]
    mask = mask_ref[...]

    b_slot = bias_ref[:, 0:NSp]                  # (1, NSp)
    b_kv = bias_ref[:, off_kv:off_kv + KV]       # (1, 2D)
    b_q = bias_ref[:, off_q:off_q + D]           # (1, D)
    b_o = bias_ref[:, off_o:off_o + NIp]         # (1, NIp)

    # --- stage 1: one tall matmul -> slot logits + emb-half of packed [K|V] --
    stage1 = jnp.dot(emb2, w1_ref[...], preferred_element_type=f32)  # (Bt*S, W1)
    slot = stage1[:, :NSp] + b_slot                                  # (Bt*S, NSp) f32
    slot_out_ref[...] = slot.astype(slot_out_ref.dtype)              # lane-dense store

    # --- stage 2: packed K|V = emb-half + slot-half + bias -------------------
    # (concat([emb, slot], -1) @ Wkv is folded into the two halves)
    kv = (stage1[:, NSp:NSp + KV]
          + jnp.dot(slot.astype(mxu_dtype), wkvs_ref[...],
                    preferred_element_type=f32)
          + b_kv)                                                    # (Bt*S, 2D)
    k = kv[:, :D].reshape(Bt, S, D)
    v = kv[:, D:].reshape(Bt, S, D)

    # --- intent cross-attention (single query per batch row) ----------------
    scale = jnp.float32(1.0) / jnp.sqrt(jnp.float32(D))
    q = (jnp.dot(pool, wq_ref[...], preferred_element_type=f32) + b_q) * scale  # (Bt, D)

    # scores via broadcast-multiply + lane reduce (no K transpose needed)
    scores = jnp.sum(q[:, None, :] * k, axis=-1)                     # (Bt, S)
    scores = jnp.where(mask > 0, scores, jnp.float32(-1e9))          # masked_fill
    scores = scores - jnp.max(scores, axis=-1, keepdims=True)
    p = jnp.exp(scores)
    inv_l = pl.reciprocal(jnp.sum(p, axis=-1, keepdims=True), approx=True)
    attn = p * inv_l                                                 # softmax (Bt, S)

    ctx = jnp.sum(attn[:, :, None] * v, axis=1)                      # (Bt, D)
    intent = (jnp.dot(ctx.astype(mxu_dtype), wo_ref[...],
                      preferred_element_type=f32) + b_o)             # (Bt, NIp)
    intent_out_ref[...] = intent.astype(intent_out_ref.dtype)        # lane-dense store


# -----------------------------------------------------------------------------
# Tiling / VMEM helpers
# -----------------------------------------------------------------------------
def _choose_bt(B, block_b):
    """Pick a sublane-aligned batch tile.  Prefer one that divides B exactly
    (avoids a host-side jnp.pad HBM copy of the embedding) and that yields
    >=2 -- ideally even -- grid steps so both v7x TensorCores get balanced
    work.  Returns (Bt, need_pad)."""
    want = _round_up(max(int(block_b), 1), 8)
    cands = [bt for bt in range(8, want + 1, 8) if B % bt == 0]
    if cands:
        for pred in (lambda n: n >= 2 and n % 2 == 0,   # both TCs, balanced
                     lambda n: n >= 2,                   # both TCs
                     lambda n: True):
            ok = [bt for bt in cands if pred(B // bt)]
            if ok:
                return max(ok), False
    return want, True      # no aligned divisor -> pad the batch (extra HBM copy)


def _vmem_limit_bytes(Bt, S, H, W1, NSp, KV, D, NIp, act_bytes, slot_bytes,
                      weight_bytes, single_buffer_weights):
    """Explicit scoped-VMEM budget sized from the real per-step footprint."""
    wbuf = 1 if single_buffer_weights else 2
    tiles = 2 * (Bt * S * H * act_bytes            # embedding tile, double-buffered
                 + Bt * H * act_bytes              # pooler tile
                 + Bt * S * 4                      # mask tile
                 + Bt * S * NSp * slot_bytes       # slot output tile
                 + Bt * NIp * 4)                   # intent output tile
    weights = wbuf * weight_bytes
    # in-kernel temporaries: stage1 + slot (f32) + kv (f32) + bf16 slot copy + misc
    temps = (Bt * S * (W1 + NSp + KV) * 4 + Bt * S * NSp * 2
             + Bt * (4 * D + 2 * NIp) * 4)
    total = int((tiles + weights + temps) * 1.5) + (2 << 20)
    # floor keeps compiler scratch happy at tiny shapes; cap = v7x physical VMEM
    return max(8 << 20, min(total, 64 << 20))


# -----------------------------------------------------------------------------
# Wrapper: batch-tiled grid, packed weights, lane-dense output slabs
# -----------------------------------------------------------------------------
def cross_att_intent_head(embedding, pooler, att_mask, packed, *,
                          block_b=8, return_padded=False):
    """Fused slot-classifier + intent cross-attention head.

    embedding: (B, S, H)   xlmr last_hidden_state
    pooler:    (B, H)      xlmr pooler_output
    att_mask:  (B, S)      1/0 attention mask
    packed:    output of pack_head_params() (call once, weights are static)
    block_b:   requested batch rows per grid step (multiple of 8; tune so
               block_b*S fills the MXU -- >=128 rows v5e, >=256 v6e/v7x -- and
               fits v7x's 64 MiB VMEM)
    return_padded: if True, return the lane-dense padded slabs directly
               (skips an extra HBM pass slicing the slot slab)
    """
    B, S, H = embedding.shape
    d = packed["dims"]
    assert H == d["H"], "embedding hidden size does not match packed weights"
    NS, NI = d["NS"], d["NI"]
    NSp, NIp, KV, D, W1 = d["NSp"], d["NIp"], d["KV"], d["D"], d["W1"]
    mxu_dtype = packed["mxu_dtype"]
    slot_dtype = packed["slot_dtype"]

    # feed activations already in the MXU dtype (halves the dominant HBM read
    # when bf16); mask stays f32 for the -1e9 masked_fill
    if embedding.dtype != mxu_dtype:
        embedding = embedding.astype(mxu_dtype)
    if pooler.dtype != mxu_dtype:
        pooler = pooler.astype(mxu_dtype)
    if att_mask.dtype != jnp.float32:
        att_mask = att_mask.astype(jnp.float32)

    Bt, need_pad = _choose_bt(B, block_b)
    B_pad = _round_up(B, Bt) if need_pad else B
    if need_pad and B_pad != B:
        pad_b = B_pad - B
        embedding = jnp.pad(embedding, ((0, pad_b), (0, 0), (0, 0)))
        pooler = jnp.pad(pooler, ((0, pad_b), (0, 0)))
        att_mask = jnp.pad(att_mask, ((0, pad_b), (0, 0)))
    n_steps = B_pad // Bt

    # tall lane-dense 2-D slab at the boundary -> no in-kernel reshape of the
    # largest tensor (contiguous reshape, no extra copy)
    emb2d = embedding.reshape(B_pad * S, H)

    act_bytes = jnp.dtype(mxu_dtype).itemsize
    slot_bytes = jnp.dtype(slot_dtype).itemsize
    weight_bytes = sum(int(packed[k].size) * jnp.dtype(packed[k].dtype).itemsize
                       for k in ("w1", "w_kv_slot", "wq", "wo", "bias"))

    out_shapes = (
        jax.ShapeDtypeStruct((B_pad * S, NSp), slot_dtype),
        jax.ShapeDtypeStruct((B_pad, NIp), jnp.float32),
    )

    def run(single_buffer_weights):
        # constant-index weight slabs do not benefit from double buffering;
        # single-buffering them frees VMEM so Bt can be raised
        wkw = ({"pipeline_mode": pl.Buffered(1)}
               if single_buffer_weights else {})
        grid_spec = pltpu.PrefetchScalarGridSpec(
            num_scalar_prefetch=0,
            grid=(n_steps,),
            in_specs=[
                pl.BlockSpec((Bt * S, H), lambda b: (b, 0)),           # embedding slab
                pl.BlockSpec((Bt, H), lambda b: (b, 0)),               # pooler tile
                pl.BlockSpec((Bt, S), lambda b: (b, 0)),               # mask tile
                pl.BlockSpec(packed["w1"].shape, lambda b: (0, 0), **wkw),
                pl.BlockSpec(packed["w_kv_slot"].shape, lambda b: (0, 0), **wkw),
                pl.BlockSpec(packed["wq"].shape, lambda b: (0, 0), **wkw),
                pl.BlockSpec(packed["wo"].shape, lambda b: (0, 0), **wkw),
                pl.BlockSpec(packed["bias"].shape, lambda b: (0, 0), **wkw),
            ],
            out_specs=[
                pl.BlockSpec((Bt * S, NSp), lambda b: (b, 0)),         # slot slab
                pl.BlockSpec((Bt, NIp), lambda b: (b, 0)),             # intent slab
            ],
        )
        vmem_limit = _vmem_limit_bytes(Bt, S, H, W1, NSp, KV, D, NIp,
                                       act_bytes, slot_bytes, weight_bytes,
                                       single_buffer_weights)
        return pl.pallas_call(
            _cross_att_intent_kernel,
            out_shape=out_shapes,
            grid_spec=grid_spec,
            compiler_params=pltpu.CompilerParams(
                dimension_semantics=("parallel",),   # batch tiles shard across TCs
                vmem_limit_bytes=vmem_limit),
        )(emb2d, pooler, att_mask,
          packed["w1"], packed["w_kv_slot"], packed["wq"], packed["wo"],
          packed["bias"])

    try:
        slot_slab, intent_slab = run(single_buffer_weights=True)
    except Exception:
        # pl.Buffered(1) not supported by this jax build -> default buffering
        slot_slab, intent_slab = run(single_buffer_weights=False)

    if return_padded:
        return intent_slab, slot_slab.reshape(B_pad, S, NSp)
    slot_logits = slot_slab.reshape(B_pad, S, NSp)[:B, :, :NS]
    intent_logits = intent_slab[:B, :NI]
    return intent_logits, slot_logits


# -----------------------------------------------------------------------------
# Deterministic "xlmr" encoder stub (plain JAX glue, not the hot path)
# -----------------------------------------------------------------------------
def encoder_stub(input_ids, att_mask, enc_params):
    """Tiny stand-in for XLMRobertaModel: embedding lookup + layernorm for the
    last_hidden_state; tanh(dense(CLS)) for the pooler output."""
    emb = enc_params["tok_emb"][input_ids]                       # (B, S, H)
    mu = jnp.mean(emb, axis=-1, keepdims=True)
    var = jnp.var(emb, axis=-1, keepdims=True)
    hidden = (emb - mu) / jnp.sqrt(var + 1e-5)                   # (B, S, H)
    hidden = hidden * att_mask[..., None]                        # zero padded tokens
    cls = hidden[:, 0, :]                                        # (B, H)
    pooler = jnp.tanh(cls @ enc_params["w_pool"] + enc_params["b_pool"])
    return hidden, pooler


# -----------------------------------------------------------------------------
# Pure-JAX reference of the head (for correctness check)
# -----------------------------------------------------------------------------
def reference_head(embedding, pooler, att_mask, p):
    slot = embedding @ p["w_slot"] + p["b_slot"]                       # (B, S, NS)
    kv_in = jnp.concatenate([embedding, slot], axis=-1)                # (B, S, H+NS)
    wk = jnp.concatenate([p["wk_emb"], p["wk_slot"]], axis=0)
    wv = jnp.concatenate([p["wv_emb"], p["wv_slot"]], axis=0)
    q = pooler[:, None, :] @ p["wq"] + p["bq"]                         # (B, 1, D)
    k = kv_in @ wk + p["bk"]                                           # (B, S, D)
    v = kv_in @ wv + p["bv"]
    scores = jnp.einsum("bqd,bsd->bqs", q, k) / jnp.sqrt(jnp.float32(q.shape[-1]))
    scores = jnp.where(att_mask[:, None, :] > 0, scores, -1e9)
    attn = jax.nn.softmax(scores, axis=-1)
    ctx = jnp.einsum("bqs,bsd->bqd", attn, v)
    intent = (ctx @ p["wo"] + p["bo"])[:, 0, :]                        # (B, NI)
    return intent, slot


# -----------------------------------------------------------------------------
# Main
# -----------------------------------------------------------------------------
if __name__ == "__main__":
    B, S = 16, 8           # batch, sequence length
    H = 32                 # "config.hidden_size"
    NS = 6                 # num_slot
    NI = 5                 # num_intent
    D = 16                 # hidden_dim of the intent attention
    VOCAB = 50
    BLOCK_B = 8            # batch tile per grid step (tune larger for real sizes)

    key = jax.random.PRNGKey(0)
    ks = jax.random.split(key, 16)

    def init(k, shape, scale=0.08):
        return (scale * jax.random.normal(k, shape)).astype(jnp.float32)

    enc_params = {
        "tok_emb": init(ks[0], (VOCAB, H), 1.0),
        "w_pool": init(ks[1], (H, H)),
        "b_pool": jnp.zeros((H,), jnp.float32),
    }

    head_params = {
        "w_slot": init(ks[2], (H, NS)),
        "b_slot": init(ks[3], (1, NS)),
        "wq": init(ks[4], (H, D)),
        "bq": init(ks[5], (1, D)),
        "wk_emb": init(ks[6], (H, D)),
        "wk_slot": init(ks[7], (NS, D)),
        "bk": init(ks[8], (1, D)),
        "wv_emb": init(ks[9], (H, D)),
        "wv_slot": init(ks[10], (NS, D)),
        "bv": init(ks[11], (1, D)),
        "wo": init(ks[12], (D, NI)),
        "bo": init(ks[13], (1, NI)),
    }

    input_ids = jax.random.randint(ks[14], (B, S), 0, VOCAB)
    # varied valid lengths (some padded rows) to exercise the masked softmax
    lens = jnp.array([S, 6, 4, 7] * (B // 4), dtype=jnp.int32)
    att_mask = (jnp.arange(S)[None, :] < lens[:, None]).astype(jnp.float32)

    embedding, pooler = encoder_stub(input_ids, att_mask, enc_params)
    ref_intent, ref_slot = reference_head(embedding, pooler, att_mask, head_params)

    # --- default perf path: bf16 MXU operands, bf16 slot store, 256-lane pack --
    packed_bf16 = pack_head_params(head_params, mxu_dtype=jnp.bfloat16,
                                   mxu_lane_multiple=256)   # packed ONCE
    intent_logits, slot_logits = cross_att_intent_head(
        embedding, pooler, att_mask, packed_bf16, block_b=BLOCK_B)
    jax.block_until_ready((intent_logits, slot_logits))

    assert intent_logits.shape == (B, NI)
    assert slot_logits.shape == (B, S, NS)
    # bf16 operands + bf16 slot store -> relaxed tolerance vs. f32 reference
    assert jnp.allclose(slot_logits.astype(jnp.float32), ref_slot,
                        atol=5e-2, rtol=5e-2)
    assert jnp.allclose(intent_logits, ref_intent, atol=5e-2, rtol=5e-2)

    # --- exactness check of the fused math itself: f32 MXU path, tight tol ----
    packed_f32 = pack_head_params(head_params, mxu_dtype=jnp.float32,
                                  slot_dtype=jnp.float32, mxu_lane_multiple=128)
    intent_f32, slot_f32 = cross_att_intent_head(
        embedding, pooler, att_mask, packed_f32, block_b=BLOCK_B)
    jax.block_until_ready((intent_f32, slot_f32))
    assert jnp.allclose(slot_f32, ref_slot, atol=1e-4, rtol=1e-4)
    # approx reciprocal in the softmax -> slightly looser tolerance for intent
    assert jnp.allclose(intent_f32, ref_intent, atol=1e-3, rtol=1e-3)

    print("KERNEL_OK")
</pallas_src>

<mosaic_0001>
module attributes {stable_mosaic.version = 11 : i64} {
  func.func @_cross_att_intent_kernel(%arg0: i32, %arg1: memref<64x32xbf16, #tpu.memory_space<vmem>>, %arg2: memref<8x32xbf16, #tpu.memory_space<vmem>>, %arg3: memref<8x8xf32, #tpu.memory_space<vmem>>, %arg4: memref<32x256xbf16, #tpu.memory_space<vmem>>, %arg5: memref<128x32xbf16, #tpu.memory_space<vmem>>, %arg6: memref<32x16xbf16, #tpu.memory_space<vmem>>, %arg7: memref<16x128xbf16, #tpu.memory_space<vmem>>, %arg8: memref<1x512xf32, #tpu.memory_space<vmem>>, %arg9: memref<64x128xbf16, #tpu.memory_space<vmem>>, %arg10: memref<8x128xf32, #tpu.memory_space<vmem>>) attributes {dimension_semantics = [#tpu.dimension_semantics<parallel>], iteration_bounds = array<i64: 2>, scalar_prefetch = 0 : i64, scratch_operands = 0 : i64, tpu.core_type = #tpu.core_type<tc>, window_params = [{transform_indices = @transform_0, window_bounds = array<i64: 64, 32>}, {transform_indices = @transform_1, window_bounds = array<i64: 8, 32>}, {transform_indices = @transform_2, window_bounds = array<i64: 8, 8>}, {pipeline_mode = #tpu.pipeline_mode<synchronous>, transform_indices = @transform_3, window_bounds = array<i64: 32, 256>}, {pipeline_mode = #tpu.pipeline_mode<synchronous>, transform_indices = @transform_4, window_bounds = array<i64: 128, 32>}, {pipeline_mode = #tpu.pipeline_mode<synchronous>, transform_indices = @transform_5, window_bounds = array<i64: 32, 16>}, {pipeline_mode = #tpu.pipeline_mode<synchronous>, transform_indices = @transform_6, window_bounds = array<i64: 16, 128>}, {pipeline_mode = #tpu.pipeline_mode<synchronous>, transform_indices = @transform_7, window_bounds = array<i64: 1, 512>}, {transform_indices = @transform_8, window_bounds = array<i64: 64, 128>}, {transform_indices = @transform_9, window_bounds = array<i64: 8, 128>}]} {
    %c0 = arith.constant 0 : index
    %c0_0 = arith.constant 0 : index
    %0 = vector.load %arg1[%c0, %c0_0] : memref<64x32xbf16, #tpu.memory_space<vmem>>, vector<64x32xbf16>
    %c0_1 = arith.constant 0 : index
    %c0_2 = arith.constant 0 : index
    %1 = vector.load %arg2[%c0_1, %c0_2] : memref<8x32xbf16, #tpu.memory_space<vmem>>, vector<8x32xbf16>
    %c0_3 = arith.constant 0 : index
    %c0_4 = arith.constant 0 : index
    %2 = vector.load %arg3[%c0_3, %c0_4] : memref<8x8xf32, #tpu.memory_space<vmem>>, vector<8x8xf32>
    %c0_5 = arith.constant 0 : index
    %c0_6 = arith.constant 0 : index
    %3 = vector.load %arg8[%c0_5, %c0_6] : memref<1x512xf32, #tpu.memory_space<vmem>>, vector<1x128xf32>
    %c0_7 = arith.constant 0 : index
    %c128 = arith.constant 128 : index
    %4 = vector.load %arg8[%c0_7, %c128] : memref<1x512xf32, #tpu.memory_space<vmem>>, vector<1x32xf32>
    %c0_8 = arith.constant 0 : index
    %c256 = arith.constant 256 : index
    %5 = vector.load %arg8[%c0_8, %c256] : memref<1x512xf32, #tpu.memory_space<vmem>>, vector<1x16xf32>
    %c0_9 = arith.constant 0 : index
    %c384 = arith.constant 384 : index
    %6 = vector.load %arg8[%c0_9, %c384] : memref<1x512xf32, #tpu.memory_space<vmem>>, vector<1x128xf32>
    %c0_10 = arith.constant 0 : index
    %c0_11 = arith.constant 0 : index
    %7 = vector.load %arg4[%c0_10, %c0_11] : memref<32x256xbf16, #tpu.memory_space<vmem>>, vector<32x256xbf16>
    %cst = arith.constant dense<0.000000e+00> : vector<64x256xf32>
    %8 = tpu.matmul %0, %7, %cst {dimension_numbers = #tpu.dot_dimension_numbers<[1], [0], [0], [1], [0, 0, 1, 1], [], []>} : vector<64x32xbf16>, vector<32x256xbf16>, vector<64x256xf32> -> vector<64x256xf32>
    %9 = vector.extract_strided_slice %8 {offsets = [0, 0], sizes = [64, 128], strides = [1, 1]} : vector<64x256xf32> to vector<64x128xf32>
    %10 = vector.broadcast %3 : vector<1x128xf32> to vector<64x128xf32>
    %11 = arith.addf %9, %10 : vector<64x128xf32>
    %12 = arith.truncf %11 : vector<64x128xf32> to vector<64x128xbf16>
    %c0_12 = arith.constant 0 : index
    %c0_13 = arith.constant 0 : index
    %13 = vector.load %arg9[%c0_12, %c0_13] : memref<64x128xbf16, #tpu.memory_space<vmem>>, vector<64x128xbf16>
    tpu.vector_store %arg9[%c0_12, %c0_13], %12 {strides = array<i32>} : memref<64x128xbf16, #tpu.memory_space<vmem>>, vector<64x128xbf16>,
    %14 = vector.extract_strided_slice %8 {offsets = [0, 128], sizes = [64, 32], strides = [1, 1]} : vector<64x256xf32> to vector<64x32xf32>
    %15 = arith.truncf %11 : vector<64x128xf32> to vector<64x128xbf16>
    %c0_14 = arith.constant 0 : index
    %c0_15 = arith.constant 0 : index
    %16 = vector.load %arg5[%c0_14, %c0_15] : memref<128x32xbf16, #tpu.memory_space<vmem>>, vector<128x32xbf16>
    %cst_16 = arith.constant dense<0.000000e+00> : vector<64x32xf32>
    %17 = tpu.matmul %15, %16, %cst_16 {dimension_numbers = #tpu.dot_dimension_numbers<[1], [0], [0], [1], [0, 0, 1, 1], [], []>} : vector<64x128xbf16>, vector<128x32xbf16>, vector<64x32xf32> -> vector<64x32xf32>
    %18 = arith.addf %14, %17 : vector<64x32xf32>
    %19 = vector.broadcast %4 : vector<1x32xf32> to vector<64x32xf32>
    %20 = arith.addf %18, %19 : vector<64x32xf32>
    %21 = vector.extract_strided_slice %20 {offsets = [0, 0], sizes = [64, 16], strides = [1, 1]} : vector<64x32xf32> to vector<64x16xf32>
    %22 = vector.shape_cast %21 : vector<64x16xf32> to vector<8x8x16xf32>
    %23 = vector.extract_strided_slice %20 {offsets = [0, 16], sizes = [64, 16], strides = [1, 1]} : vector<64x32xf32> to vector<64x16xf32>
    %24 = vector.shape_cast %23 : vector<64x16xf32> to vector<8x8x16xf32>
    %cst_17 = arith.constant 1.600000e+01 : f32
    %25 = math.sqrt %cst_17 : f32
    %cst_18 = arith.constant 1.000000e+00 : f32
    %26 = arith.divf %cst_18, %25 : f32
    %c0_19 = arith.constant 0 : index
    %c0_20 = arith.constant 0 : index
    %27 = vector.load %arg6[%c0_19, %c0_20] : memref<32x16xbf16, #tpu.memory_space<vmem>>, vector<32x16xbf16>
    %cst_21 = arith.constant dense<0.000000e+00> : vector<8x16xf32>
    %28 = tpu.matmul %1, %27, %cst_21 {dimension_numbers = #tpu.dot_dimension_numbers<[1], [0], [0], [1], [0, 0, 1, 1], [], []>} : vector<8x32xbf16>, vector<32x16xbf16>, vector<8x16xf32> -> vector<8x16xf32>
    %29 = vector.broadcast %5 : vector<1x16xf32> to vector<8x16xf32>
    %30 = arith.addf %28, %29 : vector<8x16xf32>
    %31 = vector.broadcast %26 : f32 to vector<8x16xf32>
    %32 = arith.mulf %30, %31 : vector<8x16xf32>
    %33 = vector.shape_cast %32 : vector<8x16xf32> to vector<8x1x16xf32>
    %34 = vector.broadcast %33 : vector<8x1x16xf32> to vector<8x8x16xf32>
    %35 = arith.mulf %34, %22 : vector<8x8x16xf32>
    %cst_22 = arith.constant dense<0.000000e+00> : vector<8x8xf32>
    %36 = vector.multi_reduction <add>, %35, %cst_22 [2] : vector<8x8x16xf32> to vector<8x8xf32>
    %cst_23 = arith.constant 0.000000e+00 : f32
    %37 = vector.broadcast %cst_23 : f32 to vector<8x8xf32>
    %38 = arith.cmpf ogt, %2, %37 : vector<8x8xf32>
    %cst_24 = arith.constant -1.000000e+09 : f32
    %39 = vector.broadcast %cst_24 : f32 to vector<8x8xf32>
    %40 = arith.select %38, %36, %39 : vector<8x8xi1>, vector<8x8xf32>
    %cst_25 = arith.constant dense<0xFF800000> : vector<8xf32>
    %41 = vector.multi_reduction <maximumf>, %40, %cst_25 [1] : vector<8x8xf32> to vector<8xf32>
    %42 = vector.shape_cast %41 : vector<8xf32> to vector<8x1xf32>
    %43 = vector.broadcast %42 : vector<8x1xf32> to vector<8x8xf32>
    %44 = arith.subf %40, %43 : vector<8x8xf32>
    %45 = math.exp %44 : vector<8x8xf32>
    %cst_26 = arith.constant dense<0.000000e+00> : vector<8xf32>
    %46 = vector.multi_reduction <add>, %45, %cst_26 [1] : vector<8x8xf32> to vector<8xf32>
    %47 = vector.shape_cast %46 : vector<8xf32> to vector<8x1xf32>
    %48 = tpu.reciprocal %47 {approx = true} : vector<8x1xf32> -> vector<8x1xf32>
    %49 = vector.broadcast %48 : vector<8x1xf32> to vector<8x8xf32>
    %50 = arith.mulf %45, %49 : vector<8x8xf32>
    %51 = vector.shape_cast %50 : vector<8x8xf32> to vector<8x8x1xf32>
    %52 = vector.broadcast %51 : vector<8x8x1xf32> to vector<8x8x16xf32>
    %53 = arith.mulf %52, %24 : vector<8x8x16xf32>
    %cst_27 = arith.constant dense<0.000000e+00> : vector<8x16xf32>
    %54 = vector.multi_reduction <add>, %53, %cst_27 [1] : vector<8x8x16xf32> to vector<8x16xf32>
    %55 = arith.truncf %54 : vector<8x16xf32> to vector<8x16xbf16>
    %c0_28 = arith.constant 0 : index
    %c0_29 = arith.constant 0 : index
    %56 = vector.load %arg7[%c0_28, %c0_29] : memref<16x128xbf16, #tpu.memory_space<vmem>>, vector<16x128xbf16>
    %cst_30 = arith.constant dense<0.000000e+00> : vector<8x128xf32>
    %57 = tpu.matmul %55, %56, %cst_30 {dimension_numbers = #tpu.dot_dimension_numbers<[1], [0], [0], [1], [0, 0, 1, 1], [], []>} : vector<8x16xbf16>, vector<16x128xbf16>, vector<8x128xf32> -> vector<8x128xf32>
    %58 = vector.broadcast %6 : vector<1x128xf32> to vector<8x128xf32>
    %59 = arith.addf %57, %58 : vector<8x128xf32>
    %c0_31 = arith.constant 0 : index
    %c0_32 = arith.constant 0 : index
    %60 = vector.load %arg10[%c0_31, %c0_32] : memref<8x128xf32, #tpu.memory_space<vmem>>, vector<8x128xf32>
    tpu.vector_store %arg10[%c0_31, %c0_32], %59 {strides = array<i32>} : memref<8x128xf32, #tpu.memory_space<vmem>>, vector<8x128xf32>,
    return
  }
  func.func @transform_0(%arg0: i32) -> (i32, i32) {
    %c0_i32 = arith.constant 0 : i32
    %c0_i32_0 = arith.constant 0 : i32
    return %arg0, %c0_i32 : i32, i32
  }
  func.func @transform_1(%arg0: i32) -> (i32, i32) {
    %c0_i32 = arith.constant 0 : i32
    %c0_i32_0 = arith.constant 0 : i32
    return %arg0, %c0_i32 : i32, i32
  }
  func.func @transform_2(%arg0: i32) -> (i32, i32) {
    %c0_i32 = arith.constant 0 : i32
    %c0_i32_0 = arith.constant 0 : i32
    return %arg0, %c0_i32 : i32, i32
  }
  func.func @transform_3(%arg0: i32) -> (i32, i32) {
    %c0_i32 = arith.constant 0 : i32
    %c0_i32_0 = arith.constant 0 : i32
    %c0_i32_1 = arith.constant 0 : i32
    return %c0_i32, %c0_i32_0 : i32, i32
  }
  func.func @transform_4(%arg0: i32) -> (i32, i32) {
    %c0_i32 = arith.constant 0 : i32
    %c0_i32_0 = arith.constant 0 : i32
    %c0_i32_1 = arith.constant 0 : i32
    return %c0_i32, %c0_i32_0 : i32, i32
  }
  func.func @transform_5(%arg0: i32) -> (i32, i32) {
    %c0_i32 = arith.constant 0 : i32
    %c0_i32_0 = arith.constant 0 : i32
    %c0_i32_1 = arith.constant 0 : i32
    return %c0_i32, %c0_i32_0 : i32, i32
  }
  func.func @transform_6(%arg0: i32) -> (i32, i32) {
    %c0_i32 = arith.constant 0 : i32
    %c0_i32_0 = arith.constant 0 : i32
    %c0_i32_1 = arith.constant 0 : i32
    return %c0_i32, %c0_i32_0 : i32, i32
  }
  func.func @transform_7(%arg0: i32) -> (i32, i32) {
    %c0_i32 = arith.constant 0 : i32
    %c0_i32_0 = arith.constant 0 : i32
    %c0_i32_1 = arith.constant 0 : i32
    return %c0_i32, %c0_i32_0 : i32, i32
  }
  func.func @transform_8(%arg0: i32) -> (i32, i32) {
    %c0_i32 = arith.constant 0 : i32
    %c0_i32_0 = arith.constant 0 : i32
    return %arg0, %c0_i32 : i32, i32
  }
  func.func @transform_9(%arg0: i32) -> (i32, i32) {
    %c0_i32 = arith.constant 0 : i32
    %c0_i32_0 = arith.constant 0 : i32
    return %arg0, %c0_i32 : i32, i32
  }
}

module attributes {stable_mosaic.version = 11 : i64} {
  func.func @_cross_att_intent_kernel(%arg0: i32, %arg1: memref<64x32xbf16, #tpu.memory_space<vmem>>, %arg2: memref<8x32xbf16, #tpu.memory_space<vmem>>, %arg3: memref<8x8xf32, #tpu.memory_space<vmem>>, %arg4: memref<32x256xbf16, #tpu.memory_space<vmem>>, %arg5: memref<128x32xbf16, #tpu.memory_space<vmem>>, %arg6: memref<32x16xbf16, #tpu.memory_space<vmem>>, %arg7: memref<16x128xbf16, #tpu.memory_space<vmem>>, %arg8: memref<1x512xf32, #tpu.memory_space<vmem>>, %arg9: memref<64x128xbf16, #tpu.memory_space<vmem>>, %arg10: memref<8x128xf32, #tpu.memory_space<vmem>>) attributes {dimension_semantics = [#tpu.dimension_semantics<parallel>], iteration_bounds = array<i64: 2>, scalar_prefetch = 0 : i64, scratch_operands = 0 : i64, tpu.core_type = #tpu.core_type<tc>, window_params = [{transform_indices = @transform_0, window_bounds = array<i64: 64, 32>}, {transform_indices = @transform_1, window_bounds = array<i64: 8, 32>}, {transform_indices = @transform_2, window_bounds = array<i64: 8, 8>}, {pipeline_mode = #tpu.pipeline_mode<synchronous>, transform_indices = @transform_3, window_bounds = array<i64: 32, 256>}, {pipeline_mode = #tpu.pipeline_mode<synchronous>, transform_indices = @transform_4, window_bounds = array<i64: 128, 32>}, {pipeline_mode = #tpu.pipeline_mode<synchronous>, transform_indices = @transform_5, window_bounds = array<i64: 32, 16>}, {pipeline_mode = #tpu.pipeline_mode<synchronous>, transform_indices = @transform_6, window_bounds = array<i64: 16, 128>}, {pipeline_mode = #tpu.pipeline_mode<synchronous>, transform_indices = @transform_7, window_bounds = array<i64: 1, 512>}, {transform_indices = @transform_8, window_bounds = array<i64: 64, 128>}, {transform_indices = @transform_9, window_bounds = array<i64: 8, 128>}]} {
    %c0 = arith.constant 0 : index
    %c0_0 = arith.constant 0 : index
    %0 = vector.load %arg1[%c0, %c0_0] : memref<64x32xbf16, #tpu.memory_space<vmem>>, vector<64x32xbf16>
    %c0_1 = arith.constant 0 : index
    %c0_2 = arith.constant 0 : index
    %1 = vector.load %arg2[%c0_1, %c0_2] : memref<8x32xbf16, #tpu.memory_space<vmem>>, vector<8x32xbf16>
    %c0_3 = arith.constant 0 : index
    %c0_4 = arith.constant 0 : index
    %2 = vector.load %arg3[%c0_3, %c0_4] : memref<8x8xf32, #tpu.memory_space<vmem>>, vector<8x8xf32>
    %c0_5 = arith.constant 0 : index
    %c0_6 = arith.constant 0 : index
    %3 = vector.load %arg8[%c0_5, %c0_6] : memref<1x512xf32, #tpu.memory_space<vmem>>, vector<1x128xf32>
    %c0_7 = arith.constant 0 : index
    %c128 = arith.constant 128 : index
    %4 = vector.load %arg8[%c0_7, %c128] : memref<1x512xf32, #tpu.memory_space<vmem>>, vector<1x32xf32>
    %c0_8 = arith.constant 0 : index
    %c256 = arith.constant 256 : index
    %5 = vector.load %arg8[%c0_8, %c256] : memref<1x512xf32, #tpu.memory_space<vmem>>, vector<1x16xf32>
    %c0_9 = arith.constant 0 : index
    %c384 = arith.constant 384 : index
    %6 = vector.load %arg8[%c0_9, %c384] : memref<1x512xf32, #tpu.memory_space<vmem>>, vector<1x128xf32>
    %c0_10 = arith.constant 0 : index
    %c0_11 = arith.constant 0 : index
    %7 = vector.load %arg4[%c0_10, %c0_11] : memref<32x256xbf16, #tpu.memory_space<vmem>>, vector<32x256xbf16>
    %cst = arith.constant dense<0.000000e+00> : vector<64x256xf32>
    %8 = tpu.matmul %0, %7, %cst {dimension_numbers = #tpu.dot_dimension_numbers<[1], [0], [0], [1], [0, 0, 1, 1], [], []>} : vector<64x32xbf16>, vector<32x256xbf16>, vector<64x256xf32> -> vector<64x256xf32>
    %9 = vector.extract_strided_slice %8 {offsets = [0, 0], sizes = [64, 128], strides = [1, 1]} : vector<64x256xf32> to vector<64x128xf32>
    %10 = vector.broadcast %3 : vector<1x128xf32> to vector<64x128xf32>
    %11 = arith.addf %9, %10 : vector<64x128xf32>
    %12 = arith.truncf %11 : vector<64x128xf32> to vector<64x128xbf16>
    %c0_12 = arith.constant 0 : index
    %c0_13 = arith.constant 0 : index
    %13 = vector.load %arg9[%c0_12, %c0_13] : memref<64x128xbf16, #tpu.memory_space<vmem>>, vector<64x128xbf16>
    tpu.vector_store %arg9[%c0_12, %c0_13], %12 {strides = array<i32>} : memref<64x128xbf16, #tpu.memory_space<vmem>>, vector<64x128xbf16>,
    %14 = vector.extract_strided_slice %8 {offsets = [0, 128], sizes = [64, 32], strides = [1, 1]} : vector<64x256xf32> to vector<64x32xf32>
    %15 = arith.truncf %11 : vector<64x128xf32> to vector<64x128xbf16>
    %c0_14 = arith.constant 0 : index
    %c0_15 = arith.constant 0 : index
    %16 = vector.load %arg5[%c0_14, %c0_15] : memref<128x32xbf16, #tpu.memory_space<vmem>>, vector<128x32xbf16>
    %cst_16 = arith.constant dense<0.000000e+00> : vector<64x32xf32>
    %17 = tpu.matmul %15, %16, %cst_16 {dimension_numbers = #tpu.dot_dimension_numbers<[1], [0], [0], [1], [0, 0, 1, 1], [], []>} : vector<64x128xbf16>, vector<128x32xbf16>, vector<64x32xf32> -> vector<64x32xf32>
    %18 = arith.addf %14, %17 : vector<64x32xf32>
    %19 = vector.broadcast %4 : vector<1x32xf32> to vector<64x32xf32>
    %20 = arith.addf %18, %19 : vector<64x32xf32>
    %21 = vector.extract_strided_slice %20 {offsets = [0, 0], sizes = [64, 16], strides = [1, 1]} : vector<64x32xf32> to vector<64x16xf32>
    %22 = vector.shape_cast %21 : vector<64x16xf32> to vector<8x8x16xf32>
    %23 = vector.extract_strided_slice %20 {offsets = [0, 16], sizes = [64, 16], strides = [1, 1]} : vector<64x32xf32> to vector<64x16xf32>
    %24 = vector.shape_cast %23 : vector<64x16xf32> to vector<8x8x16xf32>
    %cst_17 = arith.constant 1.600000e+01 : f32
    %25 = math.sqrt %cst_17 : f32
    %cst_18 = arith.constant 1.000000e+00 : f32
    %26 = arith.divf %cst_18, %25 : f32
    %c0_19 = arith.constant 0 : index
    %c0_20 = arith.constant 0 : index
    %27 = vector.load %arg6[%c0_19, %c0_20] : memref<32x16xbf16, #tpu.memory_space<vmem>>, vector<32x16xbf16>
    %cst_21 = arith.constant dense<0.000000e+00> : vector<8x16xf32>
    %28 = tpu.matmul %1, %27, %cst_21 {dimension_numbers = #tpu.dot_dimension_numbers<[1], [0], [0], [1], [0, 0, 1, 1], [], []>} : vector<8x32xbf16>, vector<32x16xbf16>, vector<8x16xf32> -> vector<8x16xf32>
    %29 = vector.broadcast %5 : vector<1x16xf32> to vector<8x16xf32>
    %30 = arith.addf %28, %29 : vector<8x16xf32>
    %31 = vector.broadcast %26 : f32 to vector<8x16xf32>
    %32 = arith.mulf %30, %31 : vector<8x16xf32>
    %33 = vector.shape_cast %32 : vector<8x16xf32> to vector<8x1x16xf32>
    %34 = vector.broadcast %33 : vector<8x1x16xf32> to vector<8x8x16xf32>
    %35 = arith.mulf %34, %22 : vector<8x8x16xf32>
    %cst_22 = arith.constant dense<0.000000e+00> : vector<8x8xf32>
    %36 = vector.multi_reduction <add>, %35, %cst_22 [2] : vector<8x8x16xf32> to vector<8x8xf32>
    %cst_23 = arith.constant 0.000000e+00 : f32
    %37 = vector.broadcast %cst_23 : f32 to vector<8x8xf32>
    %38 = arith.cmpf ogt, %2, %37 : vector<8x8xf32>
    %cst_24 = arith.constant -1.000000e+09 : f32
    %39 = vector.broadcast %cst_24 : f32 to vector<8x8xf32>
    %40 = arith.select %38, %36, %39 : vector<8x8xi1>, vector<8x8xf32>
    %cst_25 = arith.constant dense<0xFF800000> : vector<8xf32>
    %41 = vector.multi_reduction <maximumf>, %40, %cst_25 [1] : vector<8x8xf32> to vector<8xf32>
    %42 = vector.shape_cast %41 : vector<8xf32> to vector<8x1xf32>
    %43 = vector.broadcast %42 : vector<8x1xf32> to vector<8x8xf32>
    %44 = arith.subf %40, %43 : vector<8x8xf32>
    %45 = math.exp %44 : vector<8x8xf32>
    %cst_26 = arith.constant dense<0.000000e+00> : vector<8xf32>
    %46 = vector.multi_reduction <add>, %45, %cst_26 [1] : vector<8x8xf32> to vector<8xf32>
    %47 = vector.shape_cast %46 : vector<8xf32> to vector<8x1xf32>
    %48 = tpu.reciprocal %47 {approx = true} : vector<8x1xf32> -> vector<8x1xf32>
    %49 = vector.broadcast %48 : vector<8x1xf32> to vector<8x8xf32>
    %50 = arith.mulf %45, %49 : vector<8x8xf32>
    %51 = vector.shape_cast %50 : vector<8x8xf32> to vector<8x8x1xf32>
    %52 = vector.broadcast %51 : vector<8x8x1xf32> to vector<8x8x16xf32>
    %53 = arith.mulf %52, %24 : vector<8x8x16xf32>
    %cst_27 = arith.constant dense<0.000000e+00> : vector<8x16xf32>
    %54 = vector.multi_reduction <add>, %53, %cst_27 [1] : vector<8x8x16xf32> to vector<8x16xf32>
    %55 = arith.truncf %54 : vector<8x16xf32> to vector<8x16xbf16>
    %c0_28 = arith.constant 0 : index
    %c0_29 = arith.constant 0 : index
    %56 = vector.load %arg7[%c0_28, %c0_29] : memref<16x128xbf16, #tpu.memory_space<vmem>>, vector<16x128xbf16>
    %cst_30 = arith.constant dense<0.000000e+00> : vector<8x128xf32>
    %57 = tpu.matmul %55, %56, %cst_30 {dimension_numbers = #tpu.dot_dimension_numbers<[1], [0], [0], [1], [0, 0, 1, 1], [], []>} : vector<8x16xbf16>, vector<16x128xbf16>, vector<8x128xf32> -> vector<8x128xf32>
    %58 = vector.broadcast %6 : vector<1x128xf32> to vector<8x128xf32>
    %59 = arith.addf %57, %58 : vector<8x128xf32>
    %c0_31 = arith.constant 0 : index
    %c0_32 = arith.constant 0 : index
    %60 = vector.load %arg10[%c0_31, %c0_32] : memref<8x128xf32, #tpu.memory_space<vmem>>, vector<8x128xf32>
    tpu.vector_store %arg10[%c0_31, %c0_32], %59 {strides = array<i32>} : memref<8x128xf32, #tpu.memory_space<vmem>>, vector<8x128xf32>,
    return
  }
  func.func @transform_0(%arg0: i32) -> (i32, i32) {
    %c0_i32 = arith.constant 0 : i32
    %c0_i32_0 = arith.constant 0 : i32
    return %arg0, %c0_i32 : i32, i32
  }
  func.func @transform_1(%arg0: i32) -> (i32, i32) {
    %c0_i32 = arith.constant 0 : i32
    %c0_i32_0 = arith.constant 0 : i32
    return %arg0, %c0_i32 : i32, i32
  }
  func.func @transform_2(%arg0: i32) -> (i32, i32) {
    %c0_i32 = arith.constant 0 : i32
    %c0_i32_0 = arith.constant 0 : i32
    return %arg0, %c0_i32 : i32, i32
  }
  func.func @transform_3(%arg0: i32) -> (i32, i32) {
    %c0_i32 = arith.constant 0 : i32
    %c0_i32_0 = arith.constant 0 : i32
    %c0_i32_1 = arith.constant 0 : i32
    return %c0_i32, %c0_i32_0 : i32, i32
  }
  func.func @transform_4(%arg0: i32) -> (i32, i32) {
    %c0_i32 = arith.constant 0 : i32
    %c0_i32_0 = arith.constant 0 : i32
    %c0_i32_1 = arith.constant 0 : i32
    return %c0_i32, %c0_i32_0 : i32, i32
  }
  func.func @transform_5(%arg0: i32) -> (i32, i32) {
    %c0_i32 = arith.constant 0 : i32
    %c0_i32_0 = arith.constant 0 : i32
    %c0_i32_1 = arith.constant 0 : i32
    return %c0_i32, %c0_i32_0 : i32, i32
  }
  func.func @transform_6(%arg0: i32) -> (i32, i32) {
    %c0_i32 = arith.constant 0 : i32
    %c0_i32_0 = arith.constant 0 : i32
    %c0_i32_1 = arith.constant 0 : i32
    return %c0_i32, %c0_i32_0 : i32, i32
  }
  func.func @transform_7(%arg0: i32) -> (i32, i32) {
    %c0_i32 = arith.constant 0 : i32
    %c0_i32_0 = arith.constant 0 : i32
    %c0_i32_1 = arith.constant 0 : i32
    return %c0_i32, %c0_i32_0 : i32, i32
  }
  func.func @transform_8(%arg0: i32) -> (i32, i32) {
    %c0_i32 = arith.constant 0 : i32
    %c0_i32_0 = arith.constant 0 : i32
    return %arg0, %c0_i32 : i32, i32
  }
  func.func @transform_9(%arg0: i32) -> (i32, i32) {
    %c0_i32 = arith.constant 0 : i32
    %c0_i32_0 = arith.constant 0 : i32
    return %arg0, %c0_i32 : i32, i32
  }
}

</mosaic_0001>

<bundles_post_ra>
// kernel: tpu_custom_call.1
= control target key start
LH: loop header
LB: loop body
LE: loop exit
PB: predicated region body
PF: predicated region fallthrough
CT: control target
= control target key end

     0   :  { %s2041_s0 = inlined_call_operand.vmem [shape: bf16[128,32], index: 0, kind: input, shape index: {}]   ;;  %s2042_s1 = inlined_call_operand.vmem [shape: bf16[16,32], index: 1, kind: input, shape index: {}]   ;;  %s2043_s2 = inlined_call_operand.vmem [shape: f32[16,8], index: 2, kind: input, shape index: {}]   ;;  %s2044_s3 = inlined_call_operand.vmem [shape: bf16[32,256], index: 3, kind: input, shape index: {}]   ;;  %s2045_s4 = inlined_call_operand.vmem [shape: bf16[128,32], index: 4, kind: input, shape index: {}]   ;;  %s2046_s5 = inlined_call_operand.vmem [shape: bf16[32,16], index: 5, kind: input, shape index: {}]   ;;  %s2047_s6 = inlined_call_operand.vmem [shape: bf16[16,128], index: 6, kind: input, shape index: {}]   ;;  %s2048_s7 = inlined_call_operand.vmem [shape: f32[1,512], index: 7, kind: input, shape index: {}]   ;;  %s2049_s8 = inlined_call_operand.hbm [shape: bf16[128,128], index: 8, kind: output, shape index: {0}]   ;;  %s2050_s9 = inlined_call_operand.hbm [shape: f32[16,128], index: 9, kind: output, shape index: {1}]  }
   0x1   :  { %2051 = sst [smem:[#allocation8_spill]] %s2041_s0 }
   0x2   :  { %2052 = sst [smem:[#allocation9_spill]] %s2042_s1 }
   0x3   :  { %2053 = sst [smem:[#allocation10_spill]] %s2043_s2 }
   0x4   :  { %15 = vsyncpa [#allocation3], 0 }
   0x5   :  { %17 = vsyncpa [#allocation3 + $0x1], 0 }
   0x6   :  { %18 = vsyncpa [#allocation5], 0 }
   0x7   :  { %20 = vsyncpa [#allocation5 + $0x1], 0  ;;  %s1720_s30 = smov 0   ;;  %s1722_s10 = smov 0  }
   0x8   :  { %s1724_s11 = smov 0   ;;  %s1726_s12 = smov 0  }
   0x9 LB: > { %s1741_s13 = sadd.s32 4294967295, %s1659_s12   ;;  %s1352_s14 = sadd.s32 4294967294, %s1659_s12   ;;  %s1659_s12 = sphi %s1726_s12, %s2063_s12   ;;  %s1655_s11 = sphi %s1724_s11, %s2062_s11   ;;  %s1651_s10 = sphi %s1722_s10, %s2061_s10   ;;  %s1647_s30 = sphi %s1720_s30, %s2060_s30  }
   0xa   : > { %s1745_s15 = sadd.s32 1, %s1659_s12   ;;  %s216_s16 = sadd.s32 1, %s1655_s11 }
   0xb   : > { %s213_s17 = ssub.s32 %s1659_s12, %s1745_s15  ;;  %p226_p0 = scmp.ne.s32.totalorder %s1655_s11, %s1651_s10 }
   0xc   : > { %p214_p1 = scmp.eq.s32.totalorder %s213_s17, 0  ;;  %p227_p2 = scmp.eq.s32.totalorder %s1741_s13, 1 }
   0xd   : > { %p232_p3 = scmp.ne.s32.totalorder %s1651_s10, %s1647_s30  ;;  %p233_p4 = scmp.eq.s32.totalorder %s1352_s14, 1 }
   0xe   : > { %s1756_s18 = scalar_select %p214_p1, %s1655_s11, %s216_s16  }
   0xf   : > { %p1758_p5 = por %p227_p2, %p226_p0  ;;  %p1762_p6 = por %p233_p4, %p232_p3 }
  0x10   : > { %p1355_p7 = scmp.ge.s32.totalorder %s1659_s12, 1  ;;  %p315_p8 = scmp.lt.s32.totalorder %s1659_s12, 3 }
  0x12   : > { %p316_p9 = pnand %p1355_p7, %p315_p8 }
  0x13   : > { %s1358_s23 = sshll.u32 (!%p316_p9), %s1741_s13, 3  ;;  %s2056_s0 = sld [smem:[#allocation8_spill]] (!%p316_p9) }
  0x14   : > { %319 = sbr.rel (%p316_p9) target bundleno = 1402 (0x57a), region = 52  ;;  %p365_p10 = scmp.lt.s32.totalorder (!%p316_p9), %s1358_s23, 15 }
  0x15   : > { %p370_p11 = scmp.lt.s32.totalorder (!%p316_p9), %s1741_s13, 1  ;;  %s2057_s1 = sld [smem:[#allocation9_spill]] (!%p316_p9) }
  0x16   : > { %s1828_s24 = sand.u32 (!%p316_p9), 1, %s1651_s10   ;;  %s2058_s2 = sld [smem:[#allocation10_spill]] (!%p316_p9) }
  0x17   : > { %s1665_s14 = smov (!%p316_p9), 112   ;;  %s1414_s16 = sshll.u32 (!%p316_p9), %s1741_s13, 9 }
  0x19   : > { %v1544_v0 = vld [vmem:[%s2044_s3 + $0x14] ss:$8 sps:$4 sm:$0xff]   ;;  %v1546_v1 = vld [vmem:[%s2044_s3 + $0x10] ss:$8 sps:$4 sm:$0xff]   ;;  %v1661_v2 = vmov 0   ;;  %s2065_s23 = smov (!%p365_p10, %s1358_s23), 15  ;;  %v800_v56 = vlaneseq }
  0x1a   : > { %483 = vmatprep.mubr.bf16.mxu0 %v1661_v2  ;;  %463 = vmatprep.subr.bf16.mxu0 %v1544_v0  ;;  %v1547_v3 = vld [vmem:[%s2044_s3 + $0x4] ss:$8 sps:$4 sm:$0xff]   ;;  %v1549_v4 = vld [vmem:[%s2044_s3] ss:$8 sps:$4 sm:$0xff]   ;;  %v1554_v5 = vld [vmem:[%s2045_s4 + $0x38] sm:$0xff]   ;;  %s1359_s22 = sshll.u32 %s2065_s23, 2 }
  0x1b   : > { %464 = vmatpush1.bf16.msra.mxu0 %v1546_v1  ;;  %v1555_v6 = vld [vmem:[%s2045_s4 + $0x30] sm:$0xff]   ;;  %1455 = vmatprep.subr.bf16.mxu1 %v1554_v5  ;;  %s368_s26 = scalar_lea.vmem %s2056_s0, %s1359_s22  ;;  %v1556_v7 = vld [vmem:[%s2046_s5 + $0x8] sm:$0xff]   ;;  %vm438_vm0 = vcmask 261120   ;;  %v1662_v9 = vmov 0.0   ;;  %v1558_v11 = vld [vmem:[%s2045_s4 + $0x20] sm:$0xff]   ;;  %vm1663_vm1 = vmmov 0   ;;  %s1966_s22 = scalar_lea.hbm %s2049_s8, %s1414_s16 }
  0x1c   : > { %465 = vmatprep.subr.bf16.mxu0 %v1547_v3  ;;  %1456 = vmatpush3.bf16.msra.mxu1 %v1554_v5  ;;  %v1550_v8 = vld [vmem:[%s368_s26] sm:$0xff]   ;;  %v1557_v10 = vld [vmem:[%s2045_s4 + $0x28] sm:$0xff]   ;;  %v1552_v13 = vld [vmem:[%s368_s26 + $0x10] sm:$0xff]   ;;  %s1814_s28 = scalar_select %p370_p11, %s1741_s13, 1  ;;  %v1664_v54 = vmov 1966171168  }
  0x1d   : > { %1457 = vmatprep.subr.bf16.mxu1 %v1555_v6  ;;  %v1551_v12 = vld [vmem:[%s368_s26 + $0x8] sm:$0xff]   ;;  %v1553_v14 = vld [vmem:[%s368_s26 + $0x18] sm:$0xff]   ;;  %v1560_v16 = vld [vmem:[%s2045_s4 + $0x10] sm:$0xff]   ;;  %v798_v55 = vunpack.c.l.s4 %v1664_v54  ;;  %v1856_v60 = vshrl.u32 %v800_v56, 7  ;;  %vm893_vm2 = vcmask 130048   ;;  %vm961_vm3 = vcmask 1041409  }
  0x1e   : > { %v1559_v15 = vld [vmem:[%s2045_s4 + $0x18] sm:$0xff]   ;;  %v1561_v17 = vld [vmem:[%s2046_s5] sm:$0xff]   ;;  %s1360_s26 = sshll.u32 %s1814_s28, 2  ;;  %v1562_v18 = vld [vmem:[%s2045_s4 + $0x8] sm:$0xff]   ;;  %vm963_vm4 = vcmask 1042434   ;;  %s1361_s21 = sshll.u32 %s1814_s28, 3 }
  0x1f   : > { %466 = vmatpush1.bf16.msra.mxu0 %v1549_v4  ;;  %s373_s17 = scalar_lea.vmem %s2057_s1, %s1360_s26  ;;  %v1563_v20 = vld [vmem:[%s2045_s4] sm:$0xff]   ;;  %s1356_s26 = sshll.u32 %s1828_s24, 5  ;;  %v799_v59 = vunpack.c.0.s8 %v798_v55  ;;  %v1860_v4 = vsub.s32 0, %v1856_v60  ;;  %vm965_vm5 = vcmask 1043459   ;;  %vm967_vm6 = vcmask 1044484  }
  0x20   : > { %1479 = vmatprep.subr.bf16.mxu0 %v1662_v9  ;;  %1458 = vmatpush3.bf16.msra.mxu1 %v1555_v6  ;;  %v388_v19 = vld [vmem:[%s373_s17] sm:$0xf]  ;;  %s1838_s29 = scalar_lea.vmem [#allocation2], %s1356_s26  ;;  %s377_s27 = scalar_lea.vmem %s2058_s2, %s1361_s21  ;;  %vm969_vm7 = vcmask 1045509   ;;  %vm971_vm8 = vcmask 1046534   ;;  %vm973_vm9 = vcmask 1047559  }
  0x21   : > { %1459 = vmatprep.subr.bf16.mxu1 %v1557_v10  ;;  %v1374_v22 = vld [vmem:[%s2048_s7] ss:$0 sm:$0xff]  ;;  %v1392_v57 = vld [vmem:[%s2048_s7 + $0x2] ss:$0 sm:$0xff]  ;;  %v802_v62 = vsub.s32 %v799_v59, %v1856_v60  ;;  %v1391_v5 = vld [vmem:[%s2048_s7 + $0x1] ss:$0 sm:$0xff] }
  0x22   : > { %1370 = vmatmul.mubr.msk.bf16.vlgmr.msra.gmra.mxu0 %vm438_vm0, %v1550_v8  ;;  %vm977_vm11 = vcmask 64512   ;;  %vm1053_vm12 = vcmask 261248   ;;  %s1221_s23 = sshll.u32 %s1838_s29, 4  ;;  %s1666_s28 = smov [#allocation2]   ;;  %s1960_s23 = int_to_ptr.vmem [resolvable:$true] %s1221_s23 }
  0x23   : > { %493 = vmatprep.mubr.bf16.mxu0 %v1661_v2  ;;  %1480 = vmatpush3.bf16.msra.mxu0 %v1556_v7  ;;  %s1573_s26 = sshll.u32 %s1666_s28, 4  ;;  %s1574_s26 = int_to_ptr.vmem [resolvable:$false] %s1573_s26 }
  0x24   : > { %1481 = vmatprep.subr.bf16.mxu0 %v1662_v9  ;;  %1460 = vmatpush3.bf16.msra.mxu1 %v1557_v10  ;;  %p1576_p1 = scmp.lt.s32.totalorder %s1960_s23, %s1574_s26 }
  0x25   : > { %1461 = vmatprep.subr.bf16.mxu1 %v1558_v11 }
  0x27   : > { %1482 = vmatpush3.bf16.msra.mxu0 %v1561_v17 }
  0x28   : > { %1462 = vmatpush3.bf16.msra.mxu1 %v1558_v11  ;;  %1487 = vmatprep.subr.bf16.mxu0 %v1662_v9 }
  0x29   : > { %1463 = vmatprep.subr.bf16.mxu1 %v1559_v15 }
  0x2a   : > { %1371 = vmatmul.mubr.msk.bf16.gmra.mxu0 %vm438_vm0, %v1551_v12 }
  0x2b   : > { %503 = vmatprep.mubr.bf16.mxu0 %v1661_v2 }
  0x2c   : > { %1464 = vmatpush3.bf16.msra.mxu1 %v1559_v15 }
  0x2d   : > { %1465 = vmatprep.subr.bf16.mxu1 %v1560_v16 }
  0x30   : > { %1466 = vmatpush3.bf16.msra.mxu1 %v1560_v16 }
  0x31   : > { %1467 = vmatprep.subr.bf16.mxu1 %v1562_v18 }
  0x32   : > { %1372 = vmatmul.mubr.msk.bf16.gmra.mxu0 %vm438_vm0, %v1552_v13 }
  0x33   : > { %513 = vmatprep.mubr.bf16.mxu0 %v1661_v2 }
  0x34   : > { %1468 = vmatpush3.bf16.msra.mxu1 %v1562_v18 }
  0x35   : > { %1469 = vmatprep.subr.bf16.mxu1 %v1563_v20 }
  0x38   : > { %1470 = vmatpush3.bf16.msra.mxu1 %v1563_v20 }
  0x3a   : > { %1373 = vmatmul.mubr.msk.bf16.gmra.mxu0 %vm438_vm0, %v1553_v14 }
  0x3b   : > { %1483 = vmatprep.mubr.msk.bf16.mxu0 %vm1663_vm1, %v1662_v9 }
  0x42   : > { %1484 = vmatmul.mubr.msk.bf16.vlgmr.msra.gmra.mxu0 %vm438_vm0, %v388_v19 }
  0x43   : > { %1489 = vmatprep.mubr.msk.bf16.mxu0 %vm1663_vm1, %v1662_v9 }
  0xe2   : > { %v485_v21 = vpop.f32.mrf.mxu0 }
  0xe3   : > { %v530_v25 = vadd.f32 %v1374_v22, %v485_v21 }
  0xe4   : > { %v1833_v23 = vpop.f32.mrf.mxu0 }
  0xe6   : > { %v489_v24 = vpop.f32.mrf.mxu0 }
  0xe7   : > { %v531_v26 = vadd.f32 %v1374_v22, %v489_v24 }
  0xe8   : > { %v1836_v27 = vpop.f32.mrf.mxu0 }
  0xe9   : > { %v538_v28 = vpack.c.bf16 %v531_v26, %v530_v25 }
  0xea   : > { %v495_v29 = vpop.f32.mrf.mxu0 }
  0xeb   : > { %1419 = vst [vmem:[%s1838_s29] sm:$0xff] %v538_v28   ;;  %1471 = vmatprep.mubr.bf16.mxu1 %v538_v28  ;;  %v532_v32 = vadd.f32 %v1374_v22, %v495_v29 }
  0xec   : > { %v497_v30 = vpop.f32.mrf.mxu0 }
  0xee   : > { %v499_v31 = vpop.f32.mrf.mxu0 }
  0xef   : > { %v533_v33 = vadd.f32 %v1374_v22, %v499_v31 }
  0xf0   : > { %v501_v34 = vpop.f32.mrf.mxu0 }
  0xf1   : > { %v539_v35 = vpack.c.bf16 %v533_v33, %v532_v32 }
  0xf2   : > { %v505_v36 = vpop.f32.mrf.mxu0 }
  0xf3   : > { %1435 = vst [vmem:[%s1838_s29 + $0x8] sm:$0xff] %v539_v35   ;;  %1472 = vmatmul.mubr.bf16.vlgmr.msra.gmra.mxu1 %v539_v35  ;;  %v534_v39 = vadd.f32 %v1374_v22, %v505_v36 }
  0xf4   : > { %v1842_v37 = vpop.f32.mrf.mxu0 }
  0xf6   : > { %v509_v38 = vpop.f32.mrf.mxu0 }
  0xf7   : > { %v535_v40 = vadd.f32 %v1374_v22, %v509_v38 }
  0xf8   : > { %v1844_v41 = vpop.f32.mrf.mxu0 }
  0xf9   : > { %v540_v42 = vpack.c.bf16 %v535_v40, %v534_v39 }
  0xfa   : > { %v515_v43 = vpop.f32.mrf.mxu0 }
  0xfb   : > { %1436 = vst [vmem:[%s1838_s29 + $0x10] sm:$0xff] %v540_v42   ;;  %1475 = vmatprep.mubr.bf16.mxu1 %v540_v42  ;;  %v536_v46 = vadd.f32 %v1374_v22, %v515_v43 }
  0xfc   : > { %v1847_v44 = vpop.f32.mrf.mxu0 }
  0xfe   : > { %v519_v45 = vpop.f32.mrf.mxu0 }
  0xff   : > { %v537_v47 = vadd.f32 %v1374_v22, %v519_v45 }
 0x100   : > { %v1850_v49 = vpop.f32.mrf.mxu0 }
 0x101   : > { %v541_v48 = vpack.c.bf16 %v537_v47, %v536_v46 }
 0x102   : > { %v788_v50 = vpop.f32.mrf.mxu0 }
 0x103   : > { %1437 = vst [vmem:[%s1838_s29 + $0x18] sm:$0xff] %v541_v48   ;;  %1476 = vmatmul.mubr.bf16.gmra.mxu1 %v541_v48  ;;  %v789_v58 = vadd.f32 %v1392_v57, %v788_v50  ;;  %s1575_s29 = scalar_lea.vmem %s1574_s26, 1024 }
 0x104   : > { %v1485_v51 = vpop.f32.mrf.mxu0 }
 0x105   : > { %v794_v61 = vmul.f32 0.25, %v789_v58 }
 0x106   : > { %v791_v52 = vpop.f32.mrf.mxu0 }
 0x107   : > { %v803_v63 = vrot.slane %v794_v61, %v802_v62  ;;  %v796_v14 = vcombine.high %v794_v61, %v794_v61 }
 0x108   : > { %v1486_v53 = vpop.f32.mrf.mxu0 }
 0x109   : > { %v811_v0 = vcombine.high %v803_v63, %v803_v63  ;;  %v819_v1 = vrot.slane %v803_v63, %v802_v62  ;;  %v810_v26 = vrot.slane %v796_v14, %v802_v62 }
 0x10b   : > { %v833_v2 = vrot.slane %v811_v0, %v802_v62  ;;  %v841_v3 = vcombine.high %v819_v1, %v819_v1  ;;  %v848_v13 = vrot.slane %v819_v1, %v1860_v4  ;;  %v826_v33 = vrot.slane %v810_v26, %v802_v62 }
 0x10c   : > { %v928_v1 = vand.u32 127, %v800_v56 }
 0x10d   : > { %v856_v8 = vrot.slane %v841_v3, %v1860_v4  ;;  %v843_v9 = vcombine.high %v833_v2, %v833_v2  ;;  %v852_v21 = vrot.slane %v833_v2, %v1860_v4  ;;  %v842_v38 = vcombine.high %v826_v33, %v826_v33 }
 0x10e   : > { %v864_v45 = vrot.slane %v826_v33, %v1860_v4  ;;  %v931_v3 = vsub.s32 %v928_v1, %v1856_v60 }
 0x10f   : > { %v860_v19 = vrot.slane %v843_v9, %v1860_v4  ;;  %v872_v50 = vrot.slane %v842_v38, %v1860_v4 }
 0x1b3   : > { %v1473_v6 = vpop.f32.mrf.mxu1 }
 0x1b4   : > { %v709_v7 = vadd.f32 %v1473_v6, %v497_v30 }
 0x1b5   : > { %v676_v10 = vpop.f32.mrf.mxu1 }
 0x1b6   : > { %v1866_v11 = vadd.f32 %v1391_v5, %v709_v7  ;;  %v707_v12 = vadd.f32 %v676_v10, %v1833_v23 }
 0x1b7   : > { %v1474_v15 = vpop.f32.mrf.mxu1 }
 0x1b8   : > { %v1870_v16 = vadd.f32 %v1391_v5, %v707_v12  ;;  %v710_v17 = vadd.f32 %v1474_v15, %v501_v34  ;;  %v887_v18 = vmul.f32 %v856_v8, %v1866_v11  ;;  %v812_v34 = vcombine.high %v810_v26, %v810_v26 }
 0x1b9   : > { %v679_v20 = vpop.f32.mrf.mxu1 }
 0x1ba   : > { %v1875_v22 = vadd.f32 %v1391_v5, %v710_v17  ;;  %v708_v24 = vadd.f32 %v679_v20, %v1836_v27  ;;  %v900_v23 = vsel %vm893_vm2, %v887_v18, 0.0  ;;  %v885_v25 = vmul.f32 %v848_v13, %v1870_v16 }
 0x1bb   : > { %901 = vadd.xlane.f32.xlu1 %v900_v23  ;;  %v840_v42 = vrot.slane %v812_v34, %v802_v62 }
 0x1bc   : > { %v1880_v28 = vadd.f32 %v1391_v5, %v708_v24  ;;  %v894_v29 = vsel %vm893_vm2, %v885_v25, 0.0  ;;  %v888_v30 = vmul.f32 %v860_v19, %v1875_v22  ;;  %v389_v24 = vld [vmem:[%s377_s27] sm:$0xff]  ;;  %s1569_s27 = scalar_lea.vmem %s1960_s23, 512 }
 0x1bd   : > { %895 = vadd.xlane.f32.xlu0 %v894_v29  ;;  %v844_v53 = vcombine.high %v840_v42, %v840_v42  ;;  %vm918_vm10 = vcmp.gt.f32.partialorder %v389_v24, 0.0  ;;  %p1570_p12 = scmp.ne.s32.totalorder %s1960_s23, %s1569_s27  ;;  %p1577_p2 = scmp.lt.s32.totalorder %s1575_s29, %s1569_s27 }
 0x1be   : > { %v903_v31 = vsel %vm893_vm2, %v888_v30, 0.0  ;;  %v886_v32 = vmul.f32 %v852_v21, %v1880_v28 }
 0x1bf   : > { %904 = vadd.xlane.f32.xlu1 %v903_v31  ;;  %v876_v59 = vrot.slane %v844_v53, %v1860_v4  ;;  %v1033_v53 = vsub.s32 6, %v1856_v60  ;;  %p1571_p13 = pnand %p1570_p12, %p1758_p5  ;;  %p1578_p3 = por %p1577_p2, %p1576_p1 }
 0x1c0   : > { %v897_v27 = vsel %vm893_vm2, %v886_v32, 0.0 }
 0x1c1   : > { %898 = vadd.xlane.f32.xlu0 %v897_v27  ;;  %p1572_p0 = pneg %p1571_p13 }
 0x1c3   : > { %v1477_v35 = vpop.f32.mrf.mxu1  ;;  %p1579_p4 = pnand %p1578_p3, %p1572_p0 }
 0x1c4   : > { %v713_v36 = vadd.f32 %v1477_v35, %v1847_v44 }
 0x1c5   : > { %v692_v39 = vpop.f32.mrf.mxu1 }
 0x1c6   : > { %v711_v40 = vadd.f32 %v692_v39, %v1842_v37  ;;  %v1890_v46 = vadd.f32 %v1391_v5, %v713_v36  ;;  %v868_v37 = vrot.slane %v840_v42, %v1860_v4  ;;  %v998_v39 = vsub.s32 1, %v1856_v60 }
 0x1c7   : > { %v1478_v43 = vpop.f32.mrf.mxu1 }
 0x1c8   : > { %v1892_v47 = vadd.f32 %v1391_v5, %v711_v40  ;;  %v714_v48 = vadd.f32 %v1478_v43, %v1850_v49  ;;  %v891_v58 = vmul.f32 %v872_v50, %v1890_v46  ;;  %v1019_v50 = vsub.s32 4, %v1856_v60 }
 0x1c9   : > { %v695_v51 = vpop.f32.mrf.mxu1 }
 0x1ca   : > { %v712_v52 = vadd.f32 %v695_v51, %v1844_v41  ;;  %v889_v44 = vmul.f32 %v864_v45, %v1892_v47  ;;  %v1899_v54 = vadd.f32 %v1391_v5, %v714_v48  ;;  %v912_v41 = vsel %vm893_vm2, %v891_v58, 0.0 }
 0x1cb   : > { %v1005_v48 = vsub.s32 2, %v1856_v60  ;;  %v1026_v58 = vsub.s32 5, %v1856_v60 }
 0x1cc   : > { %v1901_v55 = vadd.f32 %v1391_v5, %v712_v52  ;;  %v906_v57 = vsel %vm893_vm2, %v889_v44, 0.0  ;;  %v892_v62 = vmul.f32 %v876_v59, %v1899_v54  ;;  %v1012_v44 = vsub.s32 3, %v1856_v60 }
 0x1cd   : > { %907 = vadd.xlane.f32.xlu0 %v906_v57 }
 0x1ce   : > { %v890_v49 = vmul.f32 %v868_v37, %v1901_v55  ;;  %v915_v63 = vsel %vm893_vm2, %v892_v62, 0.0 }
 0x1d0   : > { %v909_v61 = vsel %vm893_vm2, %v890_v49, 0.0  ;;  %v1040_v49 = vsub.s32 7, %v1856_v60 }
 0x1d1   : > { %913 = vadd.xlane.f32.xlu0 %v912_v41  ;;  %910 = vadd.xlane.f32.xlu1 %v909_v61  ;;  %v1564_v41 = vld [vmem:[%s2047_s6] sm:$0xff]  }
 0x1d2   : > { %1488 = vmatpush3.bf16.msra.mxu0 %v1564_v41 }
 0x1d5   : > { %916 = vadd.xlane.f32.xlu1 %v915_v63 }
 0x244   : > { %v902_v5 = vpop.xlane.xlu1 %901 }
 0x245   : > { %v940_v9 = vrot.slane %v902_v5, %v931_v3 }
 0x246   : > { %v896_v0 = vpop.xlane.xlu0 %895 }
 0x247   : > { %v932_v7 = vrot.slane %v896_v0, %v931_v3 }
 0x248   : > { %v905_v10 = vpop.xlane.xlu1 %904 }
 0x249   : > { %v944_v15 = vrot.slane %v905_v10, %v931_v3 }
 0x24a   : > { %v899_v2 = vpop.xlane.xlu0 %898 }
 0x24b   : > { %v936_v6 = vrot.slane %v899_v2, %v931_v3 }
 0x24d   : > { %v962_v8 = vsel %vm961_vm3, %v936_v6, %v932_v7 }
 0x24e   : > { %v964_v13 = vsel %vm963_vm4, %v940_v9, %v962_v8 }
 0x24f   : > { %v966_v18 = vsel %vm965_vm5, %v944_v15, %v964_v13 }
 0x256   : > { %v908_v12 = vpop.xlane.xlu0 %907 }
 0x257   : > { %v948_v14 = vrot.slane %v908_v12, %v931_v3 }
 0x259   : > { %v968_v20 = vsel %vm967_vm6, %v948_v14, %v966_v18 }
 0x25a   : > { %v914_v56 = vpop.xlane.xlu0 %913  ;;  %v911_v17 = vpop.xlane.xlu1 %910 }
 0x25b   : > { %v952_v19 = vrot.slane %v911_v17, %v931_v3  ;;  %v956_v21 = vrot.slane %v914_v56, %v931_v3 }
 0x25d   : > { %v970_v23 = vsel %vm969_vm7, %v952_v19, %v968_v20 }
 0x25e   : > { %v917_v25 = vpop.xlane.xlu1 %916  ;;  %v972_v29 = vsel %vm971_vm8, %v956_v21, %v970_v23 }
 0x25f   : > { %v960_v26 = vrot.slane %v917_v25, %v931_v3 }
 0x261   : > { %v974_v30 = vsel %vm973_vm9, %v960_v26, %v972_v29 }
 0x262   : > { %v976_v31 = vsel %vm918_vm10, %v974_v30, -1e+09 }
 0x263   : > { %v978_v32 = vsel %vm977_vm11, %v976_v31, -inf }
 0x264   : > { %979 = vmax.xlane.f32.xlu0 %v978_v32 }
 0x2ed   : > { %v980_v27 = vpop.xlane.xlu0 %979 }
 0x2ee   : > { %v981_v33 = vsub.f32 %v976_v31, %v980_v27 }
 0x2f0   : > { %v982_v34 = vmul.f32 1.442695, %v981_v33 }
 0x2f2   : > { %1565 = vpow2.f32 %v982_v34 }
 0x2ff   : > { %v1566_v35 = vpop.eup %1565 }
 0x300   : > { %v984_v36 = vsel %vm977_vm11, %v1566_v35, 0.0 }
 0x301   : > { %985 = vadd.xlane.f32.xlu1 %v984_v36 }
 0x38a   : > { %v986_v38 = vpop.xlane.xlu1 %985 }
 0x38b   : > { %1567 = vrcp.f32 %v986_v38 }
 0x398   : > { %v1568_v40 = vpop.eup %1567 }
 0x399   : > { %v988_v42 = vmul.f32 %v1568_v40, %v1566_v35 }
 0x39b   : > { %v999_v43 = vrot.slane %v988_v42, %v998_v39  ;;  %v992_v45 = vrot.slane %v988_v42, %v1860_v4  ;;  %v1006_v51 = vrot.slane %v988_v42, %v1005_v48  ;;  %v1020_v52 = vrot.slane %v988_v42, %v1019_v50 }
 0x39c   : > { %v1013_v37 = vrot.slane %v988_v42, %v1012_v44  ;;  %v1034_v57 = vrot.slane %v988_v42, %v1033_v53  ;;  %v1027_v4 = vrot.slane %v988_v42, %v1026_v58  ;;  %v1041_v59 = vrot.slane %v988_v42, %v1040_v49 }
 0x39d   : > { %1001 = vbcast.lane.b32.xlu1 %v999_v43, 256  ;;  %994 = vbcast.lane.b32.xlu0 %v992_v45, 256 }
 0x3a1   : > { %1008 = vbcast.lane.b32.xlu1 %v1006_v51, 256  ;;  %1022 = vbcast.lane.b32.xlu0 %v1020_v52, 256 }
 0x3a5   : > { %1015 = vbcast.lane.b32.xlu1 %v1013_v37, 256  ;;  %1036 = vbcast.lane.b32.xlu0 %v1034_v57, 256 }
 0x3a9   : > { %1029 = vbcast.lane.b32.xlu1 %v1027_v4, 256 }
 0x3ad   : > { %1043 = vbcast.lane.b32.xlu1 %v1041_v59, 256 }
 0x40f   : > { %v1002_v61 = vpop.permute.xlu1 %1001  ;;  %v995_v62 = vpop.permute.xlu0 %994 }
 0x410   : > { %v1046_v63 = vmul.f32 %v1002_v61, %v1880_v28  ;;  %v1045_v0 = vmul.f32 %v995_v62, %v1870_v16 }
 0x412   : > { %v1061_v1 = vsel %vm1053_vm12, %v1046_v63, 0.0  ;;  %v1054_v2 = vsel %vm1053_vm12, %v1045_v0, 0.0 }
 0x413   : > { %v1062_v60 = vrot.slane %v1061_v1, 4  ;;  %v1055_v3 = vrot.slane %v1054_v2, 4  ;;  %v1009_v5 = vpop.permute.xlu1 %1008  ;;  %v1023_v6 = vpop.permute.xlu0 %1022 }
 0x414   : > { %v1047_v7 = vmul.f32 %v1009_v5, %v1866_v11  ;;  %v1049_v8 = vmul.f32 %v1023_v6, %v1892_v47 }
 0x415   : > { %v1063_v9 = vadd.f32 %v1062_v60, %v1061_v1  ;;  %v1056_v10 = vadd.f32 %v1055_v3, %v1054_v2 }
 0x416   : > { %v1068_v12 = vsel %vm1053_vm12, %v1047_v7, 0.0  ;;  %v1082_v28 = vsel %vm1053_vm12, %v1049_v8, 0.0 }
 0x417   : > { %v1064_v13 = vrot.slane %v1063_v9, 2  ;;  %v1057_v16 = vrot.slane %v1056_v10, 2  ;;  %v1069_v14 = vrot.slane %v1068_v12, 4  ;;  %v1083_v15 = vrot.slane %v1082_v28, 4  ;;  %v1016_v56 = vpop.permute.xlu1 %1015  ;;  %v1037_v17 = vpop.permute.xlu0 %1036 }
 0x418   : > { %v1048_v18 = vmul.f32 %v1016_v56, %v1875_v22  ;;  %v1051_v19 = vmul.f32 %v1037_v17, %v1890_v46 }
 0x419   : > { %v1065_v20 = vadd.f32 %v1064_v13, %v1063_v9  ;;  %v1058_v11 = vadd.f32 %v1057_v16, %v1056_v10  ;;  %v1070_v21 = vadd.f32 %v1069_v14, %v1068_v12  ;;  %v1084_v47 = vadd.f32 %v1083_v15, %v1082_v28 }
 0x41a   : > { %v1075_v24 = vsel %vm1053_vm12, %v1048_v18, 0.0  ;;  %v1096_v23 = vsel %vm1053_vm12, %v1051_v19, 0.0 }
 0x41b   : > { %v1066_v25 = vrot.slane %v1065_v20, 1  ;;  %v1059_v26 = vrot.slane %v1058_v11, 1  ;;  %v1071_v29 = vrot.slane %v1070_v21, 2  ;;  %v1085_v30 = vrot.slane %v1084_v47, 2  ;;  %v1030_v31 = vpop.permute.xlu1 %1029 }
 0x41c   : > { %v1076_v32 = vrot.slane %v1075_v24, 4  ;;  %v1097_v27 = vrot.slane %v1096_v23, 4  ;;  %v1050_v33 = vmul.f32 %v1030_v31, %v1901_v55 }
 0x41d   : > { %v1067_v22 = vadd.f32 %v1066_v25, %v1065_v20  ;;  %v1060_v34 = vadd.f32 %v1059_v26, %v1058_v11  ;;  %v1072_v46 = vadd.f32 %v1071_v29, %v1070_v21  ;;  %v1086_v35 = vadd.f32 %v1085_v30, %v1084_v47 }
 0x41e   : > { %v1077_v36 = vadd.f32 %v1076_v32, %v1075_v24  ;;  %v1098_v38 = vadd.f32 %v1097_v27, %v1096_v23  ;;  %v1089_v39 = vsel %vm1053_vm12, %v1050_v33, 0.0 }
 0x41f   : > { %v1073_v40 = vrot.slane %v1072_v46, 1  ;;  %v1044_v42 = vpop.permute.xlu1 %1043  ;;  %v1090_v48 = vrot.slane %v1089_v39, 4  ;;  %v1111_v51 = vpack.c.bf16 %v1067_v22, %v1067_v22  ;;  %v1110_v52 = vpack.c.bf16 %v1060_v34, %v1060_v34 }
 0x420   : > { %v1078_v43 = vrot.slane %v1077_v36, 2  ;;  %v1099_v45 = vrot.slane %v1098_v38, 2  ;;  %v1052_v50 = vmul.f32 %v1044_v42, %v1899_v54  ;;  %v1087_v53 = vrot.slane %v1086_v35, 1 }
 0x421   : > { %v1074_v44 = vadd.f32 %v1073_v40, %v1072_v46  ;;  %v1091_v57 = vadd.f32 %v1090_v48, %v1089_v39  ;;  %v1135_v0 = vunpack.c.l.b16 %v1111_v51  ;;  %v1134_v1 = vunpack.c.l.b16 %v1110_v52 }
 0x422   : > { %v1079_v55 = vadd.f32 %v1078_v43, %v1077_v36  ;;  %v1100_v37 = vadd.f32 %v1099_v45, %v1098_v38  ;;  %v1103_v58 = vsel %vm1053_vm12, %v1052_v50, 0.0  ;;  %v1088_v62 = vadd.f32 %v1087_v53, %v1086_v35 }
 0x423   : > { %v1112_v4 = vpack.c.bf16 %v1074_v44, %v1074_v44  ;;  %v1104_v49 = vrot.slane %v1103_v58, 4  ;;  %v1092_v61 = vrot.slane %v1091_v57, 2  ;;  %v1142_v10 = vsel %vm961_vm3, %v1135_v0, %v1134_v1 }
 0x424   : > { %v1080_v59 = vrot.slane %v1079_v55, 1  ;;  %v1101_v41 = vrot.slane %v1100_v37, 1  ;;  %v1114_v8 = vpack.c.bf16 %v1088_v62, %v1088_v62 }
 0x425   : > { %v1105_v63 = vadd.f32 %v1104_v49, %v1103_v58  ;;  %v1093_v54 = vadd.f32 %v1092_v61, %v1091_v57  ;;  %v1136_v60 = vunpack.c.l.b16 %v1112_v4 }
 0x426   : > { %v1081_v2 = vadd.f32 %v1080_v59, %v1079_v55  ;;  %v1102_v6 = vadd.f32 %v1101_v41, %v1100_v37  ;;  %v1138_v17 = vunpack.c.l.b16 %v1114_v8 }
 0x427   : > { %v1106_v3 = vrot.slane %v1105_v63, 2  ;;  %v1094_v7 = vrot.slane %v1093_v54, 1  ;;  %v1143_v13 = vsel %vm963_vm4, %v1136_v60, %v1142_v10 }
 0x428   : > { %v1113_v5 = vpack.c.bf16 %v1081_v2, %v1081_v2  ;;  %v1116_v15 = vpack.c.bf16 %v1102_v6, %v1102_v6 }
 0x429   : > { %v1107_v9 = vadd.f32 %v1106_v3, %v1105_v63  ;;  %v1095_v28 = vadd.f32 %v1094_v7, %v1093_v54 }
 0x42a   : > { %v1137_v12 = vunpack.c.l.b16 %v1113_v5  ;;  %v1140_v21 = vunpack.c.l.b16 %v1116_v15 }
 0x42b   : > { %v1108_v16 = vrot.slane %v1107_v9, 1  ;;  %v1115_v56 = vpack.c.bf16 %v1095_v28, %v1095_v28 }
 0x42c   : > { %v1144_v14 = vsel %vm965_vm5, %v1137_v12, %v1143_v13 }
 0x42d   : > { %v1109_v18 = vadd.f32 %v1108_v16, %v1107_v9  ;;  %v1139_v19 = vunpack.c.l.b16 %v1115_v56  ;;  %v1145_v11 = vsel %vm967_vm6, %v1138_v17, %v1144_v14 }
 0x42f   : > { %v1117_v20 = vpack.c.bf16 %v1109_v18, %v1109_v18  ;;  %v1146_v47 = vsel %vm969_vm7, %v1139_v19, %v1145_v11 }
 0x430   : > { %v1147_v23 = vsel %vm971_vm8, %v1140_v21, %v1146_v47 }
 0x431   : > { %v1141_v24 = vunpack.c.l.b16 %v1117_v20 }
 0x433   : > { %v1148_v25 = vsel %vm973_vm9, %v1141_v24, %v1147_v23 }
 0x434   : > { %v1149_v26 = vpack.c.b16 %v1148_v25, %v1148_v25 }
 0x436   : > { %1150 = vrot.lane.b32.xlu0 %v1149_v26, %s1665_s14 }
 0x4a8   : > { %v1151_v29 = vpop.permute.xlu0 %1150 }
 0x4a9   : > { %1490 = vmatmul.mubr.msk.bf16.vlgmr.msra.gmra.mxu0 %vm893_vm2, %v1151_v29 }
 0x4aa   : > { %1582 = shalt.err (!%p1579_p4)
}
 0x4ab   : > { %s1583_s14 = scalar_lea.hbm %s1966_s22, 512  ;;  %s1587_s21 = scalar_lea.hbm %s2049_s8, 1024 }
 0x4ac   : > { %p1584_p7 = scmp.ne.s32.totalorder %s1966_s22, %s1583_s14  ;;  %p1588_p10 = scmp.lt.s32.totalorder %s1966_s22, %s2049_s8 }
 0x4ad   : > { %p1589_p11 = scmp.lt.s32.totalorder %s1587_s21, %s1583_s14 }
 0x4ae   : > { %p1585_p8 = pnand %p1584_p7, %p1758_p5 }
 0x4af   : > { %p1590_p12 = por %p1589_p11, %p1588_p10 }
 0x4b0   : > { %p1586_p9 = pneg %p1585_p8 }
 0x4b2   : > { %p1591_p13 = pnand %p1590_p12, %p1586_p9 }
 0x4b4   : > { %1594 = shalt.err (!%p1591_p13)
}
 0x4b5   : > { %s1667_s27 = smov 64   ;;  %s1668_s26 = smov 4   ;;  %v1396_v30 = vld [vmem:[%s2048_s7 + $0x3] ss:$0 sm:$0xff] }
 0x4b6   : > { %s2059_s29 = scalar_lea.sflag [#allocation3], %s1828_s24  ;;  %s1357_s16 = sshll.u32 %s1828_s24, 3 }
 0x4b7   : > { %1493 = dma.vmem_to_hbm [thread:$0]  (%p1758_p5), %s1960_s23, 512, %s1966_s22, %s2059_s29, %s1667_s27, %s1667_s27, %s1668_s26  }
 0x4b8   : > { %s1403_s14 = sshll.u32 %s1741_s13, 7  ;;  %s363_s21 = scalar_lea.vmem [#allocation4], %s1357_s16 }
 0x4b9   : > { %s1237_s28 = sshll.u32 %s363_s21, 4  ;;  %s1999_s2 = scalar_lea.hbm %s2050_s9, %s1403_s14  ;;  %s2001_s28 = int_to_ptr.vmem [resolvable:$true] %s1237_s28 }
 0x4ba   : > { %s1208_s23 = scalar_lea.sflag [#allocation5], %s1828_s24  ;;  %s1595_s22 = scalar_lea.vmem %s2001_s28, 128 }
 0x4bb   : > { %p1596_p0 = scmp.ne.s32.totalorder %s2001_s28, %s1595_s22  ;;  %s1669_s13 = smov [#allocation4]  }
 0x4bc   : > { %s1599_s27 = sshll.u32 %s1669_s13, 4  ;;  %s1600_s27 = int_to_ptr.vmem [resolvable:$false] %s1599_s27 }
 0x4bd   : > { %p1597_p1 = pnand %p1596_p0, %p1758_p5  ;;  %s1601_s0 = scalar_lea.vmem %s1600_s27, 256 }
 0x4be   : > { %p1602_p3 = scmp.lt.s32.totalorder %s2001_s28, %s1600_s27  ;;  %p1603_p4 = scmp.lt.s32.totalorder %s1601_s0, %s1595_s22 }
 0x4bf   : > { %p1598_p2 = pneg %p1597_p1 }
 0x4c0   : > { %p1604_p7 = por %p1603_p4, %p1602_p3 }
 0x4c2   : > { %p1605_p8 = pnand %p1604_p7, %p1598_p2 }
 0x569   : > { %v1195_v31 = vpop.f32.mrf.mxu0 }
 0x56a   : > { %v1196_v32 = vadd.f32 %v1396_v30, %v1195_v31 }
 0x56b   : > { %v1491_v27 = vpop.f32.mrf.mxu0 }
 0x56c   : > { %1201 = vst [vmem:[%s363_s21] sm:$0xff] %v1196_v32 }
 0x56d   : > { %v1198_v33 = vpop.f32.mrf.mxu0 }
 0x56e   : > { %1608 = shalt.err (!%p1605_p8)
}
 0x56f   : > { %s1609_s1 = scalar_lea.hbm %s1999_s2, 128  ;;  %s1613_s29 = scalar_lea.hbm %s2050_s9, 256 }
 0x570   : > { %p1610_p9 = scmp.ne.s32.totalorder %s1999_s2, %s1609_s1  ;;  %p1614_p12 = scmp.lt.s32.totalorder %s1999_s2, %s2050_s9 }
 0x571   : > { %p1615_p13 = scmp.lt.s32.totalorder %s1613_s29, %s1609_s1 }
 0x572   : > { %p1611_p10 = pnand %p1610_p9, %p1758_p5 }
 0x573   : > { %p1616_p0 = por %p1615_p13, %p1614_p12 }
 0x574   : > { %p1612_p11 = pneg %p1611_p10 }
 0x576   : > { %p1617_p1 = pnand %p1616_p0, %p1612_p11 }
 0x578   : > { %1620 = shalt.err (!%p1617_p1)
}
 0x579   : > { %1494 = dma.vmem_to_hbm [thread:$0]  (%p1758_p5), %s2001_s28, 128, %s1999_s2, %s1208_s23   ;;  %v1492_v22 = vpop.f32.mrf.mxu0 }
 0x57a PF: > { %p1504_p2 = scmp.ge.s32.totalorder %s1659_s12, 2  ;;  %s1249_s17 = sand.u32 1, %s1647_s30  }
 0x57b   : > { %s1250_s14 = scalar_lea.sflag [#allocation3], %s1249_s17 }
 0x57c   : > { %p1498_p3 = pnand %p1504_p2, %p1762_p6 }
 0x57e   : > { %p1499_p4 = pneg %p1498_p3 }
 0x580   : > { %1638 = dma.done.wait (%p1499_p4), %s1250_s14, 512  }
 0x581   : > { %1640 = vsyncadd (%p1499_p4), %s1250_s14, 4294966784  ;;  %s1259_s21 = scalar_lea.sflag [#allocation5], %s1249_s17 }
 0x582   : > { %1642 = dma.done.wait (%p1499_p4), %s1259_s21, 128  }
 0x583   : > { %1644 = vsyncadd (%p1499_p4), %s1259_s21, 4294967168  ;;  %p23_p5 = scmp.ge.s32.totalorder %s1745_s15, 4   ;;  %s2060_s30 = smov %s1651_s10 }
 0x584   : > { %s2061_s10 = smov %s1655_s11  ;;  %s2062_s11 = smov %s1756_s18 }
 0x585   : > { %s2063_s12 = smov %s1745_s15  ;;  %25 = sbr.rel (!%p23_p5) target bundleno = 9 (0x9), region = 110 }
 0x58a   :  { %1264 = vsyncpa [#allocation3], 1 }
 0x58b   :  { %1266 = vsyncpa [#allocation3 + $0x1], 1 }
 0x58c   :  { %1267 = vsyncpa [#allocation5], 1 }
 0x58d   :  { %1269 = vsyncpa [#allocation5 + $0x1], 1 }

// kernel: tpu_custom_call.1
= control target key start
LH: loop header
LB: loop body
LE: loop exit
PB: predicated region body
PF: predicated region fallthrough
CT: control target
= control target key end

     0   :  { %s2041_s0 = inlined_call_operand.vmem [shape: bf16[128,32], index: 0, kind: input, shape index: {}]   ;;  %s2042_s1 = inlined_call_operand.vmem [shape: bf16[16,32], index: 1, kind: input, shape index: {}]   ;;  %s2043_s2 = inlined_call_operand.vmem [shape: f32[16,8], index: 2, kind: input, shape index: {}]   ;;  %s2044_s3 = inlined_call_operand.vmem [shape: bf16[32,256], index: 3, kind: input, shape index: {}]   ;;  %s2045_s4 = inlined_call_operand.vmem [shape: bf16[128,32], index: 4, kind: input, shape index: {}]   ;;  %s2046_s5 = inlined_call_operand.vmem [shape: bf16[32,16], index: 5, kind: input, shape index: {}]   ;;  %s2047_s6 = inlined_call_operand.vmem [shape: bf16[16,128], index: 6, kind: input, shape index: {}]   ;;  %s2048_s7 = inlined_call_operand.vmem [shape: f32[1,512], index: 7, kind: input, shape index: {}]   ;;  %s2049_s8 = inlined_call_operand.hbm [shape: bf16[128,128], index: 8, kind: output, shape index: {0}]   ;;  %s2050_s9 = inlined_call_operand.hbm [shape: f32[16,128], index: 9, kind: output, shape index: {1}]  }
   0x1   :  { %2051 = sst [smem:[#allocation8_spill]] %s2041_s0 }
   0x2   :  { %2052 = sst [smem:[#allocation9_spill]] %s2042_s1 }
   0x3   :  { %2053 = sst [smem:[#allocation10_spill]] %s2043_s2 }
   0x4   :  { %15 = vsyncpa [#allocation3], 0 }
   0x5   :  { %17 = vsyncpa [#allocation3 + $0x1], 0 }
   0x6   :  { %18 = vsyncpa [#allocation5], 0 }
   0x7   :  { %20 = vsyncpa [#allocation5 + $0x1], 0  ;;  %s1720_s30 = smov 0   ;;  %s1722_s10 = smov 0  }
   0x8   :  { %s1724_s11 = smov 0   ;;  %s1726_s12 = smov 0  }
   0x9 LB: > { %s1741_s13 = sadd.s32 4294967295, %s1659_s12   ;;  %s1352_s14 = sadd.s32 4294967294, %s1659_s12   ;;  %s1659_s12 = sphi %s1726_s12, %s2063_s12   ;;  %s1655_s11 = sphi %s1724_s11, %s2062_s11   ;;  %s1651_s10 = sphi %s1722_s10, %s2061_s10   ;;  %s1647_s30 = sphi %s1720_s30, %s2060_s30  }
   0xa   : > { %s1745_s15 = sadd.s32 1, %s1659_s12   ;;  %s216_s16 = sadd.s32 1, %s1655_s11 }
   0xb   : > { %s213_s17 = ssub.s32 %s1659_s12, %s1745_s15  ;;  %p226_p0 = scmp.ne.s32.totalorder %s1655_s11, %s1651_s10 }
   0xc   : > { %p214_p1 = scmp.eq.s32.totalorder %s213_s17, 0  ;;  %p227_p2 = scmp.eq.s32.totalorder %s1741_s13, 1 }
   0xd   : > { %p232_p3 = scmp.ne.s32.totalorder %s1651_s10, %s1647_s30  ;;  %p233_p4 = scmp.eq.s32.totalorder %s1352_s14, 1 }
   0xe   : > { %s1756_s18 = scalar_select %p214_p1, %s1655_s11, %s216_s16  }
   0xf   : > { %p1758_p5 = por %p227_p2, %p226_p0  ;;  %p1762_p6 = por %p233_p4, %p232_p3 }
  0x10   : > { %p1355_p7 = scmp.ge.s32.totalorder %s1659_s12, 1  ;;  %p315_p8 = scmp.lt.s32.totalorder %s1659_s12, 3 }
  0x12   : > { %p316_p9 = pnand %p1355_p7, %p315_p8 }
  0x13   : > { %s1358_s23 = sshll.u32 (!%p316_p9), %s1741_s13, 3  ;;  %s2056_s0 = sld [smem:[#allocation8_spill]] (!%p316_p9) }
  0x14   : > { %319 = sbr.rel (%p316_p9) target bundleno = 1402 (0x57a), region = 52  ;;  %p365_p10 = scmp.lt.s32.totalorder (!%p316_p9), %s1358_s23, 15 }
  0x15   : > { %p370_p11 = scmp.lt.s32.totalorder (!%p316_p9), %s1741_s13, 1  ;;  %s2057_s1 = sld [smem:[#allocation9_spill]] (!%p316_p9) }
  0x16   : > { %s1828_s24 = sand.u32 (!%p316_p9), 1, %s1651_s10   ;;  %s2058_s2 = sld [smem:[#allocation10_spill]] (!%p316_p9) }
  0x17   : > { %s1665_s14 = smov (!%p316_p9), 112   ;;  %s1414_s16 = sshll.u32 (!%p316_p9), %s1741_s13, 9 }
  0x19   : > { %v1544_v0 = vld [vmem:[%s2044_s3 + $0x14] ss:$8 sps:$4 sm:$0xff]   ;;  %v1546_v1 = vld [vmem:[%s2044_s3 + $0x10] ss:$8 sps:$4 sm:$0xff]   ;;  %v1661_v2 = vmov 0   ;;  %s2065_s23 = smov (!%p365_p10, %s1358_s23), 15  ;;  %v800_v56 = vlaneseq }
  0x1a   : > { %483 = vmatprep.mubr.bf16.mxu0 %v1661_v2  ;;  %463 = vmatprep.subr.bf16.mxu0 %v1544_v0  ;;  %v1547_v3 = vld [vmem:[%s2044_s3 + $0x4] ss:$8 sps:$4 sm:$0xff]   ;;  %v1549_v4 = vld [vmem:[%s2044_s3] ss:$8 sps:$4 sm:$0xff]   ;;  %v1554_v5 = vld [vmem:[%s2045_s4 + $0x38] sm:$0xff]   ;;  %s1359_s22 = sshll.u32 %s2065_s23, 2 }
  0x1b   : > { %464 = vmatpush1.bf16.msra.mxu0 %v1546_v1  ;;  %v1555_v6 = vld [vmem:[%s2045_s4 + $0x30] sm:$0xff]   ;;  %1455 = vmatprep.subr.bf16.mxu1 %v1554_v5  ;;  %s368_s26 = scalar_lea.vmem %s2056_s0, %s1359_s22  ;;  %v1556_v7 = vld [vmem:[%s2046_s5 + $0x8] sm:$0xff]   ;;  %vm438_vm0 = vcmask 261120   ;;  %v1662_v9 = vmov 0.0   ;;  %v1558_v11 = vld [vmem:[%s2045_s4 + $0x20] sm:$0xff]   ;;  %vm1663_vm1 = vmmov 0   ;;  %s1966_s22 = scalar_lea.hbm %s2049_s8, %s1414_s16 }
  0x1c   : > { %465 = vmatprep.subr.bf16.mxu0 %v1547_v3  ;;  %1456 = vmatpush3.bf16.msra.mxu1 %v1554_v5  ;;  %v1550_v8 = vld [vmem:[%s368_s26] sm:$0xff]   ;;  %v1557_v10 = vld [vmem:[%s2045_s4 + $0x28] sm:$0xff]   ;;  %v1552_v13 = vld [vmem:[%s368_s26 + $0x10] sm:$0xff]   ;;  %s1814_s28 = scalar_select %p370_p11, %s1741_s13, 1  ;;  %v1664_v54 = vmov 1966171168  }
  0x1d   : > { %1457 = vmatprep.subr.bf16.mxu1 %v1555_v6  ;;  %v1551_v12 = vld [vmem:[%s368_s26 + $0x8] sm:$0xff]   ;;  %v1553_v14 = vld [vmem:[%s368_s26 + $0x18] sm:$0xff]   ;;  %v1560_v16 = vld [vmem:[%s2045_s4 + $0x10] sm:$0xff]   ;;  %v798_v55 = vunpack.c.l.s4 %v1664_v54  ;;  %v1856_v60 = vshrl.u32 %v800_v56, 7  ;;  %vm893_vm2 = vcmask 130048   ;;  %vm961_vm3 = vcmask 1041409  }
  0x1e   : > { %v1559_v15 = vld [vmem:[%s2045_s4 + $0x18] sm:$0xff]   ;;  %v1561_v17 = vld [vmem:[%s2046_s5] sm:$0xff]   ;;  %s1360_s26 = sshll.u32 %s1814_s28, 2  ;;  %v1562_v18 = vld [vmem:[%s2045_s4 + $0x8] sm:$0xff]   ;;  %vm963_vm4 = vcmask 1042434   ;;  %s1361_s21 = sshll.u32 %s1814_s28, 3 }
  0x1f   : > { %466 = vmatpush1.bf16.msra.mxu0 %v1549_v4  ;;  %s373_s17 = scalar_lea.vmem %s2057_s1, %s1360_s26  ;;  %v1563_v20 = vld [vmem:[%s2045_s4] sm:$0xff]   ;;  %s1356_s26 = sshll.u32 %s1828_s24, 5  ;;  %v799_v59 = vunpack.c.0.s8 %v798_v55  ;;  %v1860_v4 = vsub.s32 0, %v1856_v60  ;;  %vm965_vm5 = vcmask 1043459   ;;  %vm967_vm6 = vcmask 1044484  }
  0x20   : > { %1479 = vmatprep.subr.bf16.mxu0 %v1662_v9  ;;  %1458 = vmatpush3.bf16.msra.mxu1 %v1555_v6  ;;  %v388_v19 = vld [vmem:[%s373_s17] sm:$0xf]  ;;  %s1838_s29 = scalar_lea.vmem [#allocation2], %s1356_s26  ;;  %s377_s27 = scalar_lea.vmem %s2058_s2, %s1361_s21  ;;  %vm969_vm7 = vcmask 1045509   ;;  %vm971_vm8 = vcmask 1046534   ;;  %vm973_vm9 = vcmask 1047559  }
  0x21   : > { %1459 = vmatprep.subr.bf16.mxu1 %v1557_v10  ;;  %v1374_v22 = vld [vmem:[%s2048_s7] ss:$0 sm:$0xff]  ;;  %v1392_v57 = vld [vmem:[%s2048_s7 + $0x2] ss:$0 sm:$0xff]  ;;  %v802_v62 = vsub.s32 %v799_v59, %v1856_v60  ;;  %v1391_v5 = vld [vmem:[%s2048_s7 + $0x1] ss:$0 sm:$0xff] }
  0x22   : > { %1370 = vmatmul.mubr.msk.bf16.vlgmr.msra.gmra.mxu0 %vm438_vm0, %v1550_v8  ;;  %vm977_vm11 = vcmask 64512   ;;  %vm1053_vm12 = vcmask 261248   ;;  %s1221_s23 = sshll.u32 %s1838_s29, 4  ;;  %s1666_s28 = smov [#allocation2]   ;;  %s1960_s23 = int_to_ptr.vmem [resolvable:$true] %s1221_s23 }
  0x23   : > { %493 = vmatprep.mubr.bf16.mxu0 %v1661_v2  ;;  %1480 = vmatpush3.bf16.msra.mxu0 %v1556_v7  ;;  %s1573_s26 = sshll.u32 %s1666_s28, 4  ;;  %s1574_s26 = int_to_ptr.vmem [resolvable:$false] %s1573_s26 }
  0x24   : > { %1481 = vmatprep.subr.bf16.mxu0 %v1662_v9  ;;  %1460 = vmatpush3.bf16.msra.mxu1 %v1557_v10  ;;  %p1576_p1 = scmp.lt.s32.totalorder %s1960_s23, %s1574_s26 }
  0x25   : > { %1461 = vmatprep.subr.bf16.mxu1 %v1558_v11 }
  0x27   : > { %1482 = vmatpush3.bf16.msra.mxu0 %v1561_v17 }
  0x28   : > { %1462 = vmatpush3.bf16.msra.mxu1 %v1558_v11  ;;  %1487 = vmatprep.subr.bf16.mxu0 %v1662_v9 }
  0x29   : > { %1463 = vmatprep.subr.bf16.mxu1 %v1559_v15 }
  0x2a   : > { %1371 = vmatmul.mubr.msk.bf16.gmra.mxu0 %vm438_vm0, %v1551_v12 }
  0x2b   : > { %503 = vmatprep.mubr.bf16.mxu0 %v1661_v2 }
  0x2c   : > { %1464 = vmatpush3.bf16.msra.mxu1 %v1559_v15 }
  0x2d   : > { %1465 = vmatprep.subr.bf16.mxu1 %v1560_v16 }
  0x30   : > { %1466 = vmatpush3.bf16.msra.mxu1 %v1560_v16 }
  0x31   : > { %1467 = vmatprep.subr.bf16.mxu1 %v1562_v18 }
  0x32   : > { %1372 = vmatmul.mubr.msk.bf16.gmra.mxu0 %vm438_vm0, %v1552_v13 }
  0x33   : > { %513 = vmatprep.mubr.bf16.mxu0 %v1661_v2 }
  0x34   : > { %1468 = vmatpush3.bf16.msra.mxu1 %v1562_v18 }
  0x35   : > { %1469 = vmatprep.subr.bf16.mxu1 %v1563_v20 }
  0x38   : > { %1470 = vmatpush3.bf16.msra.mxu1 %v1563_v20 }
  0x3a   : > { %1373 = vmatmul.mubr.msk.bf16.gmra.mxu0 %vm438_vm0, %v1553_v14 }
  0x3b   : > { %1483 = vmatprep.mubr.msk.bf16.mxu0 %vm1663_vm1, %v1662_v9 }
  0x42   : > { %1484 = vmatmul.mubr.msk.bf16.vlgmr.msra.gmra.mxu0 %vm438_vm0, %v388_v19 }
  0x43   : > { %1489 = vmatprep.mubr.msk.bf16.mxu0 %vm1663_vm1, %v1662_v9 }
  0xe2   : > { %v485_v21 = vpop.f32.mrf.mxu0 }
  0xe3   : > { %v530_v25 = vadd.f32 %v1374_v22, %v485_v21 }
  0xe4   : > { %v1833_v23 = vpop.f32.mrf.mxu0 }
  0xe6   : > { %v489_v24 = vpop.f32.mrf.mxu0 }
  0xe7   : > { %v531_v26 = vadd.f32 %v1374_v22, %v489_v24 }
  0xe8   : > { %v1836_v27 = vpop.f32.mrf.mxu0 }
  0xe9   : > { %v538_v28 = vpack.c.bf16 %v531_v26, %v530_v25 }
  0xea   : > { %v495_v29 = vpop.f32.mrf.mxu0 }
  0xeb   : > { %1419 = vst [vmem:[%s1838_s29] sm:$0xff] %v538_v28   ;;  %1471 = vmatprep.mubr.bf16.mxu1 %v538_v28  ;;  %v532_v32 = vadd.f32 %v1374_v22, %v495_v29 }
  0xec   : > { %v497_v30 = vpop.f32.mrf.mxu0 }
  0xee   : > { %v499_v31 = vpop.f32.mrf.mxu0 }
  0xef   : > { %v533_v33 = vadd.f32 %v1374_v22, %v499_v31 }
  0xf0   : > { %v501_v34 = vpop.f32.mrf.mxu0 }
  0xf1   : > { %v539_v35 = vpack.c.bf16 %v533_v33, %v532_v32 }
  0xf2   : > { %v505_v36 = vpop.f32.mrf.mxu0 }
  0xf3   : > { %1435 = vst [vmem:[%s1838_s29 + $0x8] sm:$0xff] %v539_v35   ;;  %1472 = vmatmul.mubr.bf16.vlgmr.msra.gmra.mxu1 %v539_v35  ;;  %v534_v39 = vadd.f32 %v1374_v22, %v505_v36 }
  0xf4   : > { %v1842_v37 = vpop.f32.mrf.mxu0 }
  0xf6   : > { %v509_v38 = vpop.f32.mrf.mxu0 }
  0xf7   : > { %v535_v40 = vadd.f32 %v1374_v22, %v509_v38 }
  0xf8   : > { %v1844_v41 = vpop.f32.mrf.mxu0 }
  0xf9   : > { %v540_v42 = vpack.c.bf16 %v535_v40, %v534_v39 }
  0xfa   : > { %v515_v43 = vpop.f32.mrf.mxu0 }
  0xfb   : > { %1436 = vst [vmem:[%s1838_s29 + $0x10] sm:$0xff] %v540_v42   ;;  %1475 = vmatprep.mubr.bf16.mxu1 %v540_v42  ;;  %v536_v46 = vadd.f32 %v1374_v22, %v515_v43 }
  0xfc   : > { %v1847_v44 = vpop.f32.mrf.mxu0 }
  0xfe   : > { %v519_v45 = vpop.f32.mrf.mxu0 }
  0xff   : > { %v537_v47 = vadd.f32 %v1374_v22, %v519_v45 }
 0x100   : > { %v1850_v49 = vpop.f32.mrf.mxu0 }
 0x101   : > { %v541_v48 = vpack.c.bf16 %v537_v47, %v536_v46 }
 0x102   : > { %v788_v50 = vpop.f32.mrf.mxu0 }
 0x103   : > { %1437 = vst [vmem:[%s1838_s29 + $0x18] sm:$0xff] %v541_v48   ;;  %1476 = vmatmul.mubr.bf16.gmra.mxu1 %v541_v48  ;;  %v789_v58 = vadd.f32 %v1392_v57, %v788_v50  ;;  %s1575_s29 = scalar_lea.vmem %s1574_s26, 1024 }
 0x104   : > { %v1485_v51 = vpop.f32.mrf.mxu0 }
 0x105   : > { %v794_v61 = vmul.f32 0.25, %v789_v58 }
 0x106   : > { %v791_v52 = vpop.f32.mrf.mxu0 }
 0x107   : > { %v803_v63 = vrot.slane %v794_v61, %v802_v62  ;;  %v796_v14 = vcombine.high %v794_v61, %v794_v61 }
 0x108   : > { %v1486_v53 = vpop.f32.mrf.mxu0 }
 0x109   : > { %v811_v0 = vcombine.high %v803_v63, %v803_v63  ;;  %v819_v1 = vrot.slane %v803_v63, %v802_v62  ;;  %v810_v26 = vrot.slane %v796_v14, %v802_v62 }
 0x10b   : > { %v833_v2 = vrot.slane %v811_v0, %v802_v62  ;;  %v841_v3 = vcombine.high %v819_v1, %v819_v1  ;;  %v848_v13 = vrot.slane %v819_v1, %v1860_v4  ;;  %v826_v33 = vrot.slane %v810_v26, %v802_v62 }
 0x10c   : > { %v928_v1 = vand.u32 127, %v800_v56 }
 0x10d   : > { %v856_v8 = vrot.slane %v841_v3, %v1860_v4  ;;  %v843_v9 = vcombine.high %v833_v2, %v833_v2  ;;  %v852_v21 = vrot.slane %v833_v2, %v1860_v4  ;;  %v842_v38 = vcombine.high %v826_v33, %v826_v33 }
 0x10e   : > { %v864_v45 = vrot.slane %v826_v33, %v1860_v4  ;;  %v931_v3 = vsub.s32 %v928_v1, %v1856_v60 }
 0x10f   : > { %v860_v19 = vrot.slane %v843_v9, %v1860_v4  ;;  %v872_v50 = vrot.slane %v842_v38, %v1860_v4 }
 0x1b3   : > { %v1473_v6 = vpop.f32.mrf.mxu1 }
 0x1b4   : > { %v709_v7 = vadd.f32 %v1473_v6, %v497_v30 }
 0x1b5   : > { %v676_v10 = vpop.f32.mrf.mxu1 }
 0x1b6   : > { %v1866_v11 = vadd.f32 %v1391_v5, %v709_v7  ;;  %v707_v12 = vadd.f32 %v676_v10, %v1833_v23 }
 0x1b7   : > { %v1474_v15 = vpop.f32.mrf.mxu1 }
 0x1b8   : > { %v1870_v16 = vadd.f32 %v1391_v5, %v707_v12  ;;  %v710_v17 = vadd.f32 %v1474_v15, %v501_v34  ;;  %v887_v18 = vmul.f32 %v856_v8, %v1866_v11  ;;  %v812_v34 = vcombine.high %v810_v26, %v810_v26 }
 0x1b9   : > { %v679_v20 = vpop.f32.mrf.mxu1 }
 0x1ba   : > { %v1875_v22 = vadd.f32 %v1391_v5, %v710_v17  ;;  %v708_v24 = vadd.f32 %v679_v20, %v1836_v27  ;;  %v900_v23 = vsel %vm893_vm2, %v887_v18, 0.0  ;;  %v885_v25 = vmul.f32 %v848_v13, %v1870_v16 }
 0x1bb   : > { %901 = vadd.xlane.f32.xlu1 %v900_v23  ;;  %v840_v42 = vrot.slane %v812_v34, %v802_v62 }
 0x1bc   : > { %v1880_v28 = vadd.f32 %v1391_v5, %v708_v24  ;;  %v894_v29 = vsel %vm893_vm2, %v885_v25, 0.0  ;;  %v888_v30 = vmul.f32 %v860_v19, %v1875_v22  ;;  %v389_v24 = vld [vmem:[%s377_s27] sm:$0xff]  ;;  %s1569_s27 = scalar_lea.vmem %s1960_s23, 512 }
 0x1bd   : > { %895 = vadd.xlane.f32.xlu0 %v894_v29  ;;  %v844_v53 = vcombine.high %v840_v42, %v840_v42  ;;  %vm918_vm10 = vcmp.gt.f32.partialorder %v389_v24, 0.0  ;;  %p1570_p12 = scmp.ne.s32.totalorder %s1960_s23, %s1569_s27  ;;  %p1577_p2 = scmp.lt.s32.totalorder %s1575_s29, %s1569_s27 }
 0x1be   : > { %v903_v31 = vsel %vm893_vm2, %v888_v30, 0.0  ;;  %v886_v32 = vmul.f32 %v852_v21, %v1880_v28 }
 0x1bf   : > { %904 = vadd.xlane.f32.xlu1 %v903_v31  ;;  %v876_v59 = vrot.slane %v844_v53, %v1860_v4  ;;  %v1033_v53 = vsub.s32 6, %v1856_v60  ;;  %p1571_p13 = pnand %p1570_p12, %p1758_p5  ;;  %p1578_p3 = por %p1577_p2, %p1576_p1 }
 0x1c0   : > { %v897_v27 = vsel %vm893_vm2, %v886_v32, 0.0 }
 0x1c1   : > { %898 = vadd.xlane.f32.xlu0 %v897_v27  ;;  %p1572_p0 = pneg %p1571_p13 }
 0x1c3   : > { %v1477_v35 = vpop.f32.mrf.mxu1  ;;  %p1579_p4 = pnand %p1578_p3, %p1572_p0 }
 0x1c4   : > { %v713_v36 = vadd.f32 %v1477_v35, %v1847_v44 }
 0x1c5   : > { %v692_v39 = vpop.f32.mrf.mxu1 }
 0x1c6   : > { %v711_v40 = vadd.f32 %v692_v39, %v1842_v37  ;;  %v1890_v46 = vadd.f32 %v1391_v5, %v713_v36  ;;  %v868_v37 = vrot.slane %v840_v42, %v1860_v4  ;;  %v998_v39 = vsub.s32 1, %v1856_v60 }
 0x1c7   : > { %v1478_v43 = vpop.f32.mrf.mxu1 }
 0x1c8   : > { %v1892_v47 = vadd.f32 %v1391_v5, %v711_v40  ;;  %v714_v48 = vadd.f32 %v1478_v43, %v1850_v49  ;;  %v891_v58 = vmul.f32 %v872_v50, %v1890_v46  ;;  %v1019_v50 = vsub.s32 4, %v1856_v60 }
 0x1c9   : > { %v695_v51 = vpop.f32.mrf.mxu1 }
 0x1ca   : > { %v712_v52 = vadd.f32 %v695_v51, %v1844_v41  ;;  %v889_v44 = vmul.f32 %v864_v45, %v1892_v47  ;;  %v1899_v54 = vadd.f32 %v1391_v5, %v714_v48  ;;  %v912_v41 = vsel %vm893_vm2, %v891_v58, 0.0 }
 0x1cb   : > { %v1005_v48 = vsub.s32 2, %v1856_v60  ;;  %v1026_v58 = vsub.s32 5, %v1856_v60 }
 0x1cc   : > { %v1901_v55 = vadd.f32 %v1391_v5, %v712_v52  ;;  %v906_v57 = vsel %vm893_vm2, %v889_v44, 0.0  ;;  %v892_v62 = vmul.f32 %v876_v59, %v1899_v54  ;;  %v1012_v44 = vsub.s32 3, %v1856_v60 }
 0x1cd   : > { %907 = vadd.xlane.f32.xlu0 %v906_v57 }
 0x1ce   : > { %v890_v49 = vmul.f32 %v868_v37, %v1901_v55  ;;  %v915_v63 = vsel %vm893_vm2, %v892_v62, 0.0 }
 0x1d0   : > { %v909_v61 = vsel %vm893_vm2, %v890_v49, 0.0  ;;  %v1040_v49 = vsub.s32 7, %v1856_v60 }
 0x1d1   : > { %913 = vadd.xlane.f32.xlu0 %v912_v41  ;;  %910 = vadd.xlane.f32.xlu1 %v909_v61  ;;  %v1564_v41 = vld [vmem:[%s2047_s6] sm:$0xff]  }
 0x1d2   : > { %1488 = vmatpush3.bf16.msra.mxu0 %v1564_v41 }
 0x1d5   : > { %916 = vadd.xlane.f32.xlu1 %v915_v63 }
 0x244   : > { %v902_v5 = vpop.xlane.xlu1 %901 }
 0x245   : > { %v940_v9 = vrot.slane %v902_v5, %v931_v3 }
 0x246   : > { %v896_v0 = vpop.xlane.xlu0 %895 }
 0x247   : > { %v932_v7 = vrot.slane %v896_v0, %v931_v3 }
 0x248   : > { %v905_v10 = vpop.xlane.xlu1 %904 }
 0x249   : > { %v944_v15 = vrot.slane %v905_v10, %v931_v3 }
 0x24a   : > { %v899_v2 = vpop.xlane.xlu0 %898 }
 0x24b   : > { %v936_v6 = vrot.slane %v899_v2, %v931_v3 }
 0x24d   : > { %v962_v8 = vsel %vm961_vm3, %v936_v6, %v932_v7 }
 0x24e   : > { %v964_v13 = vsel %vm963_vm4, %v940_v9, %v962_v8 }
 0x24f   : > { %v966_v18 = vsel %vm965_vm5, %v944_v15, %v964_v13 }
 0x256   : > { %v908_v12 = vpop.xlane.xlu0 %907 }
 0x257   : > { %v948_v14 = vrot.slane %v908_v12, %v931_v3 }
 0x259   : > { %v968_v20 = vsel %vm967_vm6, %v948_v14, %v966_v18 }
 0x25a   : > { %v914_v56 = vpop.xlane.xlu0 %913  ;;  %v911_v17 = vpop.xlane.xlu1 %910 }
 0x25b   : > { %v952_v19 = vrot.slane %v911_v17, %v931_v3  ;;  %v956_v21 = vrot.slane %v914_v56, %v931_v3 }
 0x25d   : > { %v970_v23 = vsel %vm969_vm7, %v952_v19, %v968_v20 }
 0x25e   : > { %v917_v25 = vpop.xlane.xlu1 %916  ;;  %v972_v29 = vsel %vm971_vm8, %v956_v21, %v970_v23 }
 0x25f   : > { %v960_v26 = vrot.slane %v917_v25, %v931_v3 }
 0x261   : > { %v974_v30 = vsel %vm973_vm9, %v960_v26, %v972_v29 }
 0x262   : > { %v976_v31 = vsel %vm918_vm10, %v974_v30, -1e+09 }
 0x263   : > { %v978_v32 = vsel %vm977_vm11, %v976_v31, -inf }
 0x264   : > { %979 = vmax.xlane.f32.xlu0 %v978_v32 }
 0x2ed   : > { %v980_v27 = vpop.xlane.xlu0 %979 }
 0x2ee   : > { %v981_v33 = vsub.f32 %v976_v31, %v980_v27 }
 0x2f0   : > { %v982_v34 = vmul.f32 1.442695, %v981_v33 }
 0x2f2   : > { %1565 = vpow2.f32 %v982_v34 }
 0x2ff   : > { %v1566_v35 = vpop.eup %1565 }
 0x300   : > { %v984_v36 = vsel %vm977_vm11, %v1566_v35, 0.0 }
 0x301   : > { %985 = vadd.xlane.f32.xlu1 %v984_v36 }
 0x38a   : > { %v986_v38 = vpop.xlane.xlu1 %985 }
 0x38b   : > { %1567 = vrcp.f32 %v986_v38 }
 0x398   : > { %v1568_v40 = vpop.eup %1567 }
 0x399   : > { %v988_v42 = vmul.f32 %v1568_v40, %v1566_v35 }
 0x39b   : > { %v999_v43 = vrot.slane %v988_v42, %v998_v39  ;;  %v992_v45 = vrot.slane %v988_v42, %v1860_v4  ;;  %v1006_v51 = vrot.slane %v988_v42, %v1005_v48  ;;  %v1020_v52 = vrot.slane %v988_v42, %v1019_v50 }
 0x39c   : > { %v1013_v37 = vrot.slane %v988_v42, %v1012_v44  ;;  %v1034_v57 = vrot.slane %v988_v42, %v1033_v53  ;;  %v1027_v4 = vrot.slane %v988_v42, %v1026_v58  ;;  %v1041_v59 = vrot.slane %v988_v42, %v1040_v49 }
 0x39d   : > { %1001 = vbcast.lane.b32.xlu1 %v999_v43, 256  ;;  %994 = vbcast.lane.b32.xlu0 %v992_v45, 256 }
 0x3a1   : > { %1008 = vbcast.lane.b32.xlu1 %v1006_v51, 256  ;;  %1022 = vbcast.lane.b32.xlu0 %v1020_v52, 256 }
 0x3a5   : > { %1015 = vbcast.lane.b32.xlu1 %v1013_v37, 256  ;;  %1036 = vbcast.lane.b32.xlu0 %v1034_v57, 256 }
 0x3a9   : > { %1029 = vbcast.lane.b32.xlu1 %v1027_v4, 256 }
 0x3ad   : > { %1043 = vbcast.lane.b32.xlu1 %v1041_v59, 256 }
 0x40f   : > { %v1002_v61 = vpop.permute.xlu1 %1001  ;;  %v995_v62 = vpop.permute.xlu0 %994 }
 0x410   : > { %v1046_v63 = vmul.f32 %v1002_v61, %v1880_v28  ;;  %v1045_v0 = vmul.f32 %v995_v62, %v1870_v16 }
 0x412   : > { %v1061_v1 = vsel %vm1053_vm12, %v1046_v63, 0.0  ;;  %v1054_v2 = vsel %vm1053_vm12, %v1045_v0, 0.0 }
 0x413   : > { %v1062_v60 = vrot.slane %v1061_v1, 4  ;;  %v1055_v3 = vrot.slane %v1054_v2, 4  ;;  %v1009_v5 = vpop.permute.xlu1 %1008  ;;  %v1023_v6 = vpop.permute.xlu0 %1022 }
 0x414   : > { %v1047_v7 = vmul.f32 %v1009_v5, %v1866_v11  ;;  %v1049_v8 = vmul.f32 %v1023_v6, %v1892_v47 }
 0x415   : > { %v1063_v9 = vadd.f32 %v1062_v60, %v1061_v1  ;;  %v1056_v10 = vadd.f32 %v1055_v3, %v1054_v2 }
 0x416   : > { %v1068_v12 = vsel %vm1053_vm12, %v1047_v7, 0.0  ;;  %v1082_v28 = vsel %vm1053_vm12, %v1049_v8, 0.0 }
 0x417   : > { %v1064_v13 = vrot.slane %v1063_v9, 2  ;;  %v1057_v16 = vrot.slane %v1056_v10, 2  ;;  %v1069_v14 = vrot.slane %v1068_v12, 4  ;;  %v1083_v15 = vrot.slane %v1082_v28, 4  ;;  %v1016_v56 = vpop.permute.xlu1 %1015  ;;  %v1037_v17 = vpop.permute.xlu0 %1036 }
 0x418   : > { %v1048_v18 = vmul.f32 %v1016_v56, %v1875_v22  ;;  %v1051_v19 = vmul.f32 %v1037_v17, %v1890_v46 }
 0x419   : > { %v1065_v20 = vadd.f32 %v1064_v13, %v1063_v9  ;;  %v1058_v11 = vadd.f32 %v1057_v16, %v1056_v10  ;;  %v1070_v21 = vadd.f32 %v1069_v14, %v1068_v12  ;;  %v1084_v47 = vadd.f32 %v1083_v15, %v1082_v28 }
 0x41a   : > { %v1075_v24 = vsel %vm1053_vm12, %v1048_v18, 0.0  ;;  %v1096_v23 = vsel %vm1053_vm12, %v1051_v19, 0.0 }
 0x41b   : > { %v1066_v25 = vrot.slane %v1065_v20, 1  ;;  %v1059_v26 = vrot.slane %v1058_v11, 1  ;;  %v1071_v29 = vrot.slane %v1070_v21, 2  ;;  %v1085_v30 = vrot.slane %v1084_v47, 2  ;;  %v1030_v31 = vpop.permute.xlu1 %1029 }
 0x41c   : > { %v1076_v32 = vrot.slane %v1075_v24, 4  ;;  %v1097_v27 = vrot.slane %v1096_v23, 4  ;;  %v1050_v33 = vmul.f32 %v1030_v31, %v1901_v55 }
 0x41d   : > { %v1067_v22 = vadd.f32 %v1066_v25, %v1065_v20  ;;  %v1060_v34 = vadd.f32 %v1059_v26, %v1058_v11  ;;  %v1072_v46 = vadd.f32 %v1071_v29, %v1070_v21  ;;  %v1086_v35 = vadd.f32 %v1085_v30, %v1084_v47 }
 0x41e   : > { %v1077_v36 = vadd.f32 %v1076_v32, %v1075_v24  ;;  %v1098_v38 = vadd.f32 %v1097_v27, %v1096_v23  ;;  %v1089_v39 = vsel %vm1053_vm12, %v1050_v33, 0.0 }
 0x41f   : > { %v1073_v40 = vrot.slane %v1072_v46, 1  ;;  %v1044_v42 = vpop.permute.xlu1 %1043  ;;  %v1090_v48 = vrot.slane %v1089_v39, 4  ;;  %v1111_v51 = vpack.c.bf16 %v1067_v22, %v1067_v22  ;;  %v1110_v52 = vpack.c.bf16 %v1060_v34, %v1060_v34 }
 0x420   : > { %v1078_v43 = vrot.slane %v1077_v36, 2  ;;  %v1099_v45 = vrot.slane %v1098_v38, 2  ;;  %v1052_v50 = vmul.f32 %v1044_v42, %v1899_v54  ;;  %v1087_v53 = vrot.slane %v1086_v35, 1 }
 0x421   : > { %v1074_v44 = vadd.f32 %v1073_v40, %v1072_v46  ;;  %v1091_v57 = vadd.f32 %v1090_v48, %v1089_v39  ;;  %v1135_v0 = vunpack.c.l.b16 %v1111_v51  ;;  %v1134_v1 = vunpack.c.l.b16 %v1110_v52 }
 0x422   : > { %v1079_v55 = vadd.f32 %v1078_v43, %v1077_v36  ;;  %v1100_v37 = vadd.f32 %v1099_v45, %v1098_v38  ;;  %v1103_v58 = vsel %vm1053_vm12, %v1052_v50, 0.0  ;;  %v1088_v62 = vadd.f32 %v1087_v53, %v1086_v35 }
 0x423   : > { %v1112_v4 = vpack.c.bf16 %v1074_v44, %v1074_v44  ;;  %v1104_v49 = vrot.slane %v1103_v58, 4  ;;  %v1092_v61 = vrot.slane %v1091_v57, 2  ;;  %v1142_v10 = vsel %vm961_vm3, %v1135_v0, %v1134_v1 }
 0x424   : > { %v1080_v59 = vrot.slane %v1079_v55, 1  ;;  %v1101_v41 = vrot.slane %v1100_v37, 1  ;;  %v1114_v8 = vpack.c.bf16 %v1088_v62, %v1088_v62 }
 0x425   : > { %v1105_v63 = vadd.f32 %v1104_v49, %v1103_v58  ;;  %v1093_v54 = vadd.f32 %v1092_v61, %v1091_v57  ;;  %v1136_v60 = vunpack.c.l.b16 %v1112_v4 }
 0x426   : > { %v1081_v2 = vadd.f32 %v1080_v59, %v1079_v55  ;;  %v1102_v6 = vadd.f32 %v1101_v41, %v1100_v37  ;;  %v1138_v17 = vunpack.c.l.b16 %v1114_v8 }
 0x427   : > { %v1106_v3 = vrot.slane %v1105_v63, 2  ;;  %v1094_v7 = vrot.slane %v1093_v54, 1  ;;  %v1143_v13 = vsel %vm963_vm4, %v1136_v60, %v1142_v10 }
 0x428   : > { %v1113_v5 = vpack.c.bf16 %v1081_v2, %v1081_v2  ;;  %v1116_v15 = vpack.c.bf16 %v1102_v6, %v1102_v6 }
 0x429   : > { %v1107_v9 = vadd.f32 %v1106_v3, %v1105_v63  ;;  %v1095_v28 = vadd.f32 %v1094_v7, %v1093_v54 }
 0x42a   : > { %v1137_v12 = vunpack.c.l.b16 %v1113_v5  ;;  %v1140_v21 = vunpack.c.l.b16 %v1116_v15 }
 0x42b   : > { %v1108_v16 = vrot.slane %v1107_v9, 1  ;;  %v1115_v56 = vpack.c.bf16 %v1095_v28, %v1095_v28 }
 0x42c   : > { %v1144_v14 = vsel %vm965_vm5, %v1137_v12, %v1143_v13 }
 0x42d   : > { %v1109_v18 = vadd.f32 %v1108_v16, %v1107_v9  ;;  %v1139_v19 = vunpack.c.l.b16 %v1115_v56  ;;  %v1145_v11 = vsel %vm967_vm6, %v1138_v17, %v1144_v14 }
 0x42f   : > { %v1117_v20 = vpack.c.bf16 %v1109_v18, %v1109_v18  ;;  %v1146_v47 = vsel %vm969_vm7, %v1139_v19, %v1145_v11 }
 0x430   : > { %v1147_v23 = vsel %vm971_vm8, %v1140_v21, %v1146_v47 }
 0x431   : > { %v1141_v24 = vunpack.c.l.b16 %v1117_v20 }
 0x433   : > { %v1148_v25 = vsel %vm973_vm9, %v1141_v24, %v1147_v23 }
 0x434   : > { %v1149_v26 = vpack.c.b16 %v1148_v25, %v1148_v25 }
 0x436   : > { %1150 = vrot.lane.b32.xlu0 %v1149_v26, %s1665_s14 }
 0x4a8   : > { %v1151_v29 = vpop.permute.xlu0 %1150 }
 0x4a9   : > { %1490 = vmatmul.mubr.msk.bf16.vlgmr.msra.gmra.mxu0 %vm893_vm2, %v1151_v29 }
 0x4aa   : > { %1582 = shalt.err (!%p1579_p4)
}
 0x4ab   : > { %s1583_s14 = scalar_lea.hbm %s1966_s22, 512  ;;  %s1587_s21 = scalar_lea.hbm %s2049_s8, 1024 }
 0x4ac   : > { %p1584_p7 = scmp.ne.s32.totalorder %s1966_s22, %s1583_s14  ;;  %p1588_p10 = scmp.lt.s32.totalorder %s1966_s22, %s2049_s8 }
 0x4ad   : > { %p1589_p11 = scmp.lt.s32.totalorder %s1587_s21, %s1583_s14 }
 0x4ae   : > { %p1585_p8 = pnand %p1584_p7, %p1758_p5 }
 0x4af   : > { %p1590_p12 = por %p1589_p11, %p1588_p10 }
 0x4b0   : > { %p1586_p9 = pneg %p1585_p8 }
 0x4b2   : > { %p1591_p13 = pnand %p1590_p12, %p1586_p9 }
 0x4b4   : > { %1594 = shalt.err (!%p1591_p13)
}
 0x4b5   : > { %s1667_s27 = smov 64   ;;  %s1668_s26 = smov 4   ;;  %v1396_v30 = vld [vmem:[%s2048_s7 + $0x3] ss:$0 sm:$0xff] }
 0x4b6   : > { %s2059_s29 = scalar_lea.sflag [#allocation3], %s1828_s24  ;;  %s1357_s16 = sshll.u32 %s1828_s24, 3 }
 0x4b7   : > { %1493 = dma.vmem_to_hbm [thread:$0]  (%p1758_p5), %s1960_s23, 512, %s1966_s22, %s2059_s29, %s1667_s27, %s1667_s27, %s1668_s26  }
 0x4b8   : > { %s1403_s14 = sshll.u32 %s1741_s13, 7  ;;  %s363_s21 = scalar_lea.vmem [#allocation4], %s1357_s16 }
 0x4b9   : > { %s1237_s28 = sshll.u32 %s363_s21, 4  ;;  %s1999_s2 = scalar_lea.hbm %s2050_s9, %s1403_s14  ;;  %s2001_s28 = int_to_ptr.vmem [resolvable:$true] %s1237_s28 }
 0x4ba   : > { %s1208_s23 = scalar_lea.sflag [#allocation5], %s1828_s24  ;;  %s1595_s22 = scalar_lea.vmem %s2001_s28, 128 }
 0x4bb   : > { %p1596_p0 = scmp.ne.s32.totalorder %s2001_s28, %s1595_s22  ;;  %s1669_s13 = smov [#allocation4]  }
 0x4bc   : > { %s1599_s27 = sshll.u32 %s1669_s13, 4  ;;  %s1600_s27 = int_to_ptr.vmem [resolvable:$false] %s1599_s27 }
 0x4bd   : > { %p1597_p1 = pnand %p1596_p0, %p1758_p5  ;;  %s1601_s0 = scalar_lea.vmem %s1600_s27, 256 }
 0x4be   : > { %p1602_p3 = scmp.lt.s32.totalorder %s2001_s28, %s1600_s27  ;;  %p1603_p4 = scmp.lt.s32.totalorder %s1601_s0, %s1595_s22 }
 0x4bf   : > { %p1598_p2 = pneg %p1597_p1 }
 0x4c0   : > { %p1604_p7 = por %p1603_p4, %p1602_p3 }
 0x4c2   : > { %p1605_p8 = pnand %p1604_p7, %p1598_p2 }
 0x569   : > { %v1195_v31 = vpop.f32.mrf.mxu0 }
 0x56a   : > { %v1196_v32 = vadd.f32 %v1396_v30, %v1195_v31 }
 0x56b   : > { %v1491_v27 = vpop.f32.mrf.mxu0 }
 0x56c   : > { %1201 = vst [vmem:[%s363_s21] sm:$0xff] %v1196_v32 }
 0x56d   : > { %v1198_v33 = vpop.f32.mrf.mxu0 }
 0x56e   : > { %1608 = shalt.err (!%p1605_p8)
}
 0x56f   : > { %s1609_s1 = scalar_lea.hbm %s1999_s2, 128  ;;  %s1613_s29 = scalar_lea.hbm %s2050_s9, 256 }
 0x570   : > { %p1610_p9 = scmp.ne.s32.totalorder %s1999_s2, %s1609_s1  ;;  %p1614_p12 = scmp.lt.s32.totalorder %s1999_s2, %s2050_s9 }
 0x571   : > { %p1615_p13 = scmp.lt.s32.totalorder %s1613_s29, %s1609_s1 }
 0x572   : > { %p1611_p10 = pnand %p1610_p9, %p1758_p5 }
 0x573   : > { %p1616_p0 = por %p1615_p13, %p1614_p12 }
 0x574   : > { %p1612_p11 = pneg %p1611_p10 }
 0x576   : > { %p1617_p1 = pnand %p1616_p0, %p1612_p11 }
 0x578   : > { %1620 = shalt.err (!%p1617_p1)
}
 0x579   : > { %1494 = dma.vmem_to_hbm [thread:$0]  (%p1758_p5), %s2001_s28, 128, %s1999_s2, %s1208_s23   ;;  %v1492_v22 = vpop.f32.mrf.mxu0 }
 0x57a PF: > { %p1504_p2 = scmp.ge.s32.totalorder %s1659_s12, 2  ;;  %s1249_s17 = sand.u32 1, %s1647_s30  }
 0x57b   : > { %s1250_s14 = scalar_lea.sflag [#allocation3], %s1249_s17 }
 0x57c   : > { %p1498_p3 = pnand %p1504_p2, %p1762_p6 }
 0x57e   : > { %p1499_p4 = pneg %p1498_p3 }
 0x580   : > { %1638 = dma.done.wait (%p1499_p4), %s1250_s14, 512  }
 0x581   : > { %1640 = vsyncadd (%p1499_p4), %s1250_s14, 4294966784  ;;  %s1259_s21 = scalar_lea.sflag [#allocation5], %s1249_s17 }
 0x582   : > { %1642 = dma.done.wait (%p1499_p4), %s1259_s21, 128  }
 0x583   : > { %1644 = vsyncadd (%p1499_p4), %s1259_s21, 4294967168  ;;  %p23_p5 = scmp.ge.s32.totalorder %s1745_s15, 4   ;;  %s2060_s30 = smov %s1651_s10 }
 0x584   : > { %s2061_s10 = smov %s1655_s11  ;;  %s2062_s11 = smov %s1756_s18 }
 0x585   : > { %s2063_s12 = smov %s1745_s15  ;;  %25 = sbr.rel (!%p23_p5) target bundleno = 9 (0x9), region = 110 }
 0x58a   :  { %1264 = vsyncpa [#allocation3], 1 }
 0x58b   :  { %1266 = vsyncpa [#allocation3 + $0x1], 1 }
 0x58c   :  { %1267 = vsyncpa [#allocation5], 1 }
 0x58d   :  { %1269 = vsyncpa [#allocation5 + $0x1], 1 }

</bundles_post_ra>
